<compile_context>
chip_gen: v5e
topology: v5e:2x2
jax: 0.10.0
libtpu: 0.0.40
codegen_flags: <defaults>
</compile_context>

<pallas_src>
import functools
import math

import jax
import jax.numpy as jnp
from jax import lax
from jax.experimental import pallas as pl
from jax.experimental.pallas import tpu as pltpu

# Hyper-parameters from AdvancedLoss.__init__ (module has no trainable weights).
NUM_CLASSES = 4
FOCAL_ALPHA = 1.0
FOCAL_GAMMA = 2.0          # gamma == 2.0 is implemented as an explicit square below
DICE_WEIGHT = 0.3
BOUNDARY_WEIGHT = 0.2
LABEL_SMOOTHING = 0.1
DICE_SMOOTH = 1e-6

_MiB = 1024 * 1024


def _ceil_to(x, m):
    return ((x + m - 1) // m) * m


def _tpu_vmem_and_multicore():
    """(per-core VMEM bytes, chip-likely-has-2-TensorCores?) with a safe fallback."""
    vmem = 64 * _MiB
    try:
        info = pltpu.get_tpu_info()
        v = getattr(info, "vmem_capacity_bytes", None)
        if v:
            vmem = int(v)
    except Exception:
        pass
    # v7x-class chips pair 2 TensorCores with 64 MiB VMEM each; v5e/v6e are
    # single-core with 128 MiB.  Use the VMEM size as the generation signal.
    return vmem, vmem <= 64 * _MiB


def _workset_bytes(C, nb, s_blk, in_itemsize):
    """Honest per-grid-step VMEM estimate: padded temporaries + double-buffered IO."""
    nb_p = _ceil_to(max(nb, 1), 8)          # sublane padding
    s_p = _ceil_to(s_blk, 128)              # lane padding
    full = C * nb_p * s_p * 4               # one (C, nb, s) f32 temporary
    row = nb_p * s_p * 4                    # one (1, nb, s) f32 temporary
    io = 2 * (C * nb * s_blk * in_itemsize + nb * s_blk * 4)
    return 10 * full + 8 * row + io


def _choose_blocks(N, C, H, W, in_itemsize, payload, multi_tc):
    """Pick (N_pad, nb, s_blk): batch rows 8-aligned (or full), row-aligned lane tiles."""
    S = H * W
    if N % 8 == 0:
        n_pad, nb = N, 8
    elif N > 8:
        n_pad, nb = _ceil_to(N, 8), 8       # ragged tail handled by in-kernel row mask
    else:
        n_pad, nb = N, N                    # small batch: single block, no padding
    # Spatial tiles: whole image rows, lane width a multiple of 128 (or the full image).
    row_align = 128 // math.gcd(128, W)
    rpt_cands = [d for d in range(H, 0, -1)
                 if H % d == 0 and (d == H or d % row_align == 0)]
    rpt = rpt_cands[-1]                     # best-effort fallback: smallest legal tile
    for d in rpt_cands:                     # descending: biggest tile that fits budget
        if _workset_bytes(C, nb, d * W, in_itemsize) <= payload:
            rpt = d
            break
    s_blk = rpt * W
    # Grow nb while it fits; keep >=2 batch blocks only on dual-TensorCore chips.
    while True:
        cand = nb * 2
        if cand > n_pad or n_pad % cand:
            break
        if multi_tc and n_pad // cand < 2:
            break
        if _workset_bytes(C, cand, s_blk, in_itemsize) > payload:
            break
        nb = cand
    return n_pad, nb, s_blk


def _advanced_loss_kernel(x_ref, t_ref, scal_ref, cls_ref, carry_ref, *,
                          eps, alpha, height, width, n_valid):
    """Partial reductions for one (batch-block, spatial-block) grid point.

    x_ref     : (C, NB, SB) logits (class leading, batch on sublanes, pixels on lanes)
    t_ref     : (1, NB, SB) int32 targets, ignore_index = -1 (also padded batch rows)
    scal_ref  : (1, 8)  f32 [ce_sum, valid_count, focal_sum, boundary_sum, 0, 0, 0, 0]
    cls_ref   : (C, 8)  f32 columns = [intersection, pred_sum, target_sum, 0, ...]
    carry_ref : (C, NB, W) f32 last image row of the previous spatial block (grad_y seam)
    """
    x = x_ref[...].astype(jnp.float32)
    t = t_ref[...]
    C, NB, SB = x.shape
    H, W = height, width
    sj = pl.program_id(1)

    # Numerically stable softmax over the leading (untiled) class axis.
    m = jnp.max(x, axis=0, keepdims=True)                 # (1, NB, SB)
    xm = x - m
    ex = jnp.exp(xm)
    denom = jnp.sum(ex, axis=0, keepdims=True)
    p = ex * pl.reciprocal(denom, approx=True)            # EUP slot; ~2^-12 rel err OK for a loss
    log_denom = jnp.log(denom)

    valid = t >= 0                                         # ignore_index / padded rows
    validf = valid.astype(jnp.float32)                     # (1, NB, SB)
    t_safe = jnp.where(valid, t, 0)
    cls_iota = lax.broadcasted_iota(jnp.int32, (C, NB, SB), 0)
    oh = (cls_iota == t_safe).astype(jnp.float32)          # one-hot (C, NB, SB)
    poh = p * oh

    # log-softmax pieces without materializing logp.
    x_t = jnp.sum(xm * oh, axis=0, keepdims=True)          # (1, NB, SB)
    sum_xm = jnp.sum(xm, axis=0, keepdims=True)
    nll = log_denom - x_t
    sum_neg_logp = C * log_denom - sum_xm

    # Label-smoothed CE (masked sum) and focal (gamma == 2 -> square), masks fused in.
    ce_sum = jnp.sum(((1.0 - eps) * nll + (eps / C) * sum_neg_logp) * validf)
    valid_count = jnp.sum(validf)
    pt = jnp.sum(poh, axis=0, keepdims=True)               # target-class prob
    omp = 1.0 - pt
    focal_sum = jnp.sum((alpha * omp * omp * nll) * validf)

    # Padded batch rows must not pollute dice/boundary: mask on the sublane axis
    # AFTER the lane reduction, so no full-size multiply is needed.
    if n_valid is not None:
        b_iota = lax.broadcasted_iota(jnp.int32, (1, NB, 1), 1)
        rowmask = ((pl.program_id(0) * NB + b_iota) < n_valid).astype(jnp.float32)
    else:
        rowmask = None

    def _lane_sum(a):                                      # (c, NB, s) -> (c, NB, 1)
        return jnp.sum(a, axis=2, keepdims=True)

    def _mask_rows(a):                                     # (c, NB, 1) -> (c, NB, 1)
        return a if rowmask is None else a * rowmask

    # Dice partials per class.  NOTE: like the PyTorch reference (one_hot(-1) would
    # raise), dice assumes no ignored pixels; any -1 targets map to class 0 here.
    inter = jnp.sum(_mask_rows(_lane_sum(poh)), axis=1)    # (C, 1)
    psum = jnp.sum(_mask_rows(_lane_sum(p)), axis=1)       # (C, 1)
    tsum = jnp.sum(_mask_rows(_lane_sum(oh)), axis=1)      # (C, 1)

    # Boundary partials: forward differences via pltpu.roll (XLU) + static masks,
    # pre-scaled so ONE fused reduction yields grad_x.mean() + grad_y.mean() up to
    # the 1/(N*C) factor applied in the wrapper.
    inv_x = 1.0 / (H * (W - 1)) if W > 1 else 0.0
    inv_y = 1.0 / ((H - 1) * W) if H > 1 else 0.0
    lane = lax.broadcasted_iota(jnp.int32, (1, 1, SB), 2)
    col = (lane & (W - 1)) if (W & (W - 1)) == 0 else (lane % W)
    mask_x = jnp.where(col != W - 1, inv_x, 0.0)           # drop row-wrap pairs
    mask_y = jnp.where(lane < SB - W, inv_y, 0.0)          # drop block-last-row pairs (seam below)
    p_right = pltpu.roll(p, shift=SB - 1, axis=2)          # p[(s+1) % SB]
    p_down = pltpu.roll(p, shift=SB - W, axis=2)           # p[(s+W) % SB]
    bnd_elem = jnp.abs(p_right - p) * mask_x + jnp.abs(p_down - p) * mask_y
    bnd_sum = jnp.sum(_mask_rows(_lane_sum(bnd_elem)))

    # grad_y seam: this block's first image row vs the previous block's last row,
    # carried in VMEM scratch.  At the first spatial block the carry is primed with
    # the first row itself, so the seam contributes exactly zero there.
    @pl.when(sj == 0)
    def _():
        carry_ref[...] = p[:, :, :W]
    seam = jnp.abs(p[:, :, :W] - carry_ref[...])            # (C, NB, W)
    bnd_sum = bnd_sum + inv_y * jnp.sum(_mask_rows(_lane_sum(seam)))
    carry_ref[...] = p[:, :, SB - W:]                       # last row for the next block

    # Per-grid-point partial outputs (no cross-step accumulation -> megacore-safe).
    sidx = lax.broadcasted_iota(jnp.int32, (1, 8), 1)
    scal_ref[...] = (jnp.where(sidx == 0, ce_sum, 0.0)
                     + jnp.where(sidx == 1, valid_count, 0.0)
                     + jnp.where(sidx == 2, focal_sum, 0.0)
                     + jnp.where(sidx == 3, bnd_sum, 0.0))
    cidx = lax.broadcasted_iota(jnp.int32, (C, 8), 1)
    cls_ref[...] = (jnp.where(cidx == 0, inter, 0.0)
                    + jnp.where(cidx == 1, psum, 0.0)
                    + jnp.where(cidx == 2, tsum, 0.0))


def advanced_loss(logits, targets):
    """logits: (N, C, H, W) float; targets: (N, H, W) int (>= 0 for dice, -1 = ignore)."""
    N, C, H, W = logits.shape
    S = H * W

    vmem_cap, multi_tc = _tpu_vmem_and_multicore()
    payload = int(vmem_cap * 0.35)                 # per-step working-set budget
    in_itemsize = jnp.dtype(logits.dtype).itemsize
    n_pad, nb, s_blk = _choose_blocks(N, C, H, W, in_itemsize, payload, multi_tc)
    g_b, g_s = n_pad // nb, S // s_blk

    # Class-leading, lane-dense layout: class on an untiled leading axis, batch on
    # sublanes, flattened row-major pixels on lanes.
    x = jnp.transpose(logits, (1, 0, 2, 3)).reshape(C, N, S)
    t = targets.astype(jnp.int32).reshape(1, N, S)
    if n_pad != N:
        x = jnp.pad(x, ((0, 0), (0, n_pad - N), (0, 0)))
        t = jnp.pad(t, ((0, 0), (0, n_pad - N), (0, 0)), constant_values=-1)

    work = _workset_bytes(C, nb, s_blk, in_itemsize)
    vmem_limit = int(min(int(vmem_cap * 0.8), max(32 * _MiB, 2 * work)))

    kernel = functools.partial(
        _advanced_loss_kernel, eps=LABEL_SMOOTHING, alpha=FOCAL_ALPHA,
        height=H, width=W, n_valid=(N if n_pad != N else None))

    scal, cls = pl.pallas_call(
        kernel,
        out_shape=(jax.ShapeDtypeStruct((g_b, g_s, 1, 8), jnp.float32),
                   jax.ShapeDtypeStruct((g_b, g_s, C, 8), jnp.float32)),
        grid=(g_b, g_s),
        in_specs=[
            pl.BlockSpec((C, nb, s_blk), lambda b, s: (0, b, s)),
            pl.BlockSpec((1, nb, s_blk), lambda b, s: (0, b, s)),
        ],
        out_specs=(
            pl.BlockSpec((None, None, 1, 8), lambda b, s: (b, s, 0, 0)),
            pl.BlockSpec((None, None, C, 8), lambda b, s: (b, s, 0, 0)),
        ),
        scratch_shapes=[pltpu.VMEM((C, nb, W), jnp.float32)],
        compiler_params=pltpu.CompilerParams(
            dimension_semantics=("parallel", "arbitrary"),
            vmem_limit_bytes=vmem_limit),
    )(x, t)

    # Tiny cross-block reduction + scalar combine in plain JAX.
    s = jnp.sum(scal, axis=(0, 1))[0]                       # (8,)
    c = jnp.sum(cls, axis=(0, 1))                           # (C, 8)
    ce_sum, valid_count, focal_sum, bnd_sum = s[0], s[1], s[2], s[3]
    inter, psum, tsum = c[:, 0], c[:, 1], c[:, 2]

    ce = ce_sum / valid_count                               # CE: mean over non-ignored pixels
    focal = focal_sum / (N * H * W)                         # focal: .mean() over ALL pixels
    dice = (2.0 * inter + DICE_SMOOTH) / (psum + tsum + DICE_SMOOTH)
    dice_loss = jnp.mean(1.0 - dice)
    boundary = bnd_sum / (N * C)                            # grad_x.mean() + grad_y.mean()
    return ce + focal + DICE_WEIGHT * dice_loss + BOUNDARY_WEIGHT * boundary


if __name__ == "__main__":
    key = jax.random.PRNGKey(0)
    k1, k2 = jax.random.split(key)
    N, C, H, W = 2, NUM_CLASSES, 16, 16
    logits = jax.random.normal(k1, (N, C, H, W), dtype=jnp.float32)
    # Dice's one_hot requires valid class ids (PyTorch would error on -1), so all valid.
    targets = jax.random.randint(k2, (N, H, W), 0, C, dtype=jnp.int32)

    loss = jax.jit(advanced_loss)(logits, targets)
    jax.block_until_ready(loss)
    print("KERNEL_OK")
</pallas_src>

<mosaic_0001>
module attributes {stable_mosaic.version = 11 : i64} {
  func.func @_advanced_loss_kernel(%arg0: i32, %arg1: i32, %arg2: memref<4x2x256xf32, #tpu.memory_space<vmem>>, %arg3: memref<1x2x256xi32, #tpu.memory_space<vmem>>, %arg4: memref<1x1x1x8xf32, #tpu.memory_space<vmem>>, %arg5: memref<1x1x4x8xf32, #tpu.memory_space<vmem>>, %arg6: memref<4x2x16xf32, #tpu.memory_space<vmem>>) attributes {dimension_semantics = [#tpu.dimension_semantics<parallel>, #tpu.dimension_semantics<arbitrary>], iteration_bounds = array<i64: 1, 1>, scalar_prefetch = 0 : i64, scratch_operands = 1 : i64, tpu.core_type = #tpu.core_type<tc>, window_params = [{transform_indices = @transform_0, window_bounds = array<i64: 4, 2, 256>}, {transform_indices = @transform_1, window_bounds = array<i64: 1, 2, 256>}, {transform_indices = @transform_2, window_bounds = array<i64: 1, 1, 1, 8>}, {transform_indices = @transform_3, window_bounds = array<i64: 1, 1, 4, 8>}]} {
    %c0 = arith.constant 0 : index
    %c0_0 = arith.constant 0 : index
    %c0_1 = arith.constant 0 : index
    %0 = vector.load %arg2[%c0, %c0_0, %c0_1] : memref<4x2x256xf32, #tpu.memory_space<vmem>>, vector<4x2x256xf32>
    %c0_2 = arith.constant 0 : index
    %c0_3 = arith.constant 0 : index
    %c0_4 = arith.constant 0 : index
    %1 = vector.load %arg3[%c0_2, %c0_3, %c0_4] : memref<1x2x256xi32, #tpu.memory_space<vmem>>, vector<1x2x256xi32>
    %cst = arith.constant dense<0xFF800000> : vector<2x256xf32>
    %2 = vector.multi_reduction <maximumf>, %0, %cst [0] : vector<4x2x256xf32> to vector<2x256xf32>
    %3 = vector.shape_cast %2 : vector<2x256xf32> to vector<1x2x256xf32>
    %4 = vector.broadcast %3 : vector<1x2x256xf32> to vector<4x2x256xf32>
    %5 = arith.subf %0, %4 : vector<4x2x256xf32>
    %6 = math.exp %5 : vector<4x2x256xf32>
    %cst_5 = arith.constant dense<0.000000e+00> : vector<2x256xf32>
    %7 = vector.multi_reduction <add>, %6, %cst_5 [0] : vector<4x2x256xf32> to vector<2x256xf32>
    %8 = vector.shape_cast %7 : vector<2x256xf32> to vector<1x2x256xf32>
    %9 = tpu.reciprocal %8 {approx = true} : vector<1x2x256xf32> -> vector<1x2x256xf32>
    %10 = vector.broadcast %9 : vector<1x2x256xf32> to vector<4x2x256xf32>
    %11 = arith.mulf %6, %10 : vector<4x2x256xf32>
    %12 = math.log %8 : vector<1x2x256xf32>
    %c0_i32 = arith.constant 0 : i32
    %13 = vector.broadcast %c0_i32 : i32 to vector<1x2x256xi32>
    %14 = arith.cmpi sge, %1, %13 : vector<1x2x256xi32>
    %15 = arith.extui %14 : vector<1x2x256xi1> to vector<1x2x256xi32>
    %16 = arith.sitofp %15 : vector<1x2x256xi32> to vector<1x2x256xf32>
    %c0_i32_6 = arith.constant 0 : i32
    %17 = vector.broadcast %c0_i32_6 : i32 to vector<1x2x256xi32>
    %18 = arith.select %14, %1, %17 : vector<1x2x256xi1>, vector<1x2x256xi32>
    %19 = tpu.iota {dimensions = array<i32: 0>} : vector<4x2x256xi32>
    %20 = vector.broadcast %18 : vector<1x2x256xi32> to vector<4x2x256xi32>
    %21 = arith.cmpi eq, %19, %20 : vector<4x2x256xi32>
    %22 = arith.extui %21 : vector<4x2x256xi1> to vector<4x2x256xi32>
    %23 = arith.sitofp %22 : vector<4x2x256xi32> to vector<4x2x256xf32>
    %24 = arith.mulf %11, %23 : vector<4x2x256xf32>
    %25 = arith.mulf %5, %23 : vector<4x2x256xf32>
    %cst_7 = arith.constant dense<0.000000e+00> : vector<2x256xf32>
    %26 = vector.multi_reduction <add>, %25, %cst_7 [0] : vector<4x2x256xf32> to vector<2x256xf32>
    %27 = vector.shape_cast %26 : vector<2x256xf32> to vector<1x2x256xf32>
    %cst_8 = arith.constant dense<0.000000e+00> : vector<2x256xf32>
    %28 = vector.multi_reduction <add>, %5, %cst_8 [0] : vector<4x2x256xf32> to vector<2x256xf32>
    %29 = vector.shape_cast %28 : vector<2x256xf32> to vector<1x2x256xf32>
    %30 = arith.subf %12, %27 : vector<1x2x256xf32>
    %cst_9 = arith.constant 4.000000e+00 : f32
    %31 = vector.broadcast %cst_9 : f32 to vector<1x2x256xf32>
    %32 = arith.mulf %31, %12 : vector<1x2x256xf32>
    %33 = arith.subf %32, %29 : vector<1x2x256xf32>
    %cst_10 = arith.constant 0.899999976 : f32
    %34 = vector.broadcast %cst_10 : f32 to vector<1x2x256xf32>
    %35 = arith.mulf %34, %30 : vector<1x2x256xf32>
    %cst_11 = arith.constant 2.500000e-02 : f32
    %36 = vector.broadcast %cst_11 : f32 to vector<1x2x256xf32>
    %37 = arith.mulf %36, %33 : vector<1x2x256xf32>
    %38 = arith.addf %35, %37 : vector<1x2x256xf32>
    %39 = arith.mulf %38, %16 : vector<1x2x256xf32>
    %40 = vector.shape_cast %39 : vector<1x2x256xf32> to vector<1x1x2x256xf32>
    %cst_12 = arith.constant dense<0.000000e+00> : vector<1xf32>
    %41 = vector.multi_reduction <add>, %40, %cst_12 [1, 2, 3] : vector<1x1x2x256xf32> to vector<1xf32>
    %42 = vector.shape_cast %41 : vector<1xf32> to vector<1x1x1x1xf32>
    %43 = vector.extract %42[0, 0, 0, 0] : f32 from vector<1x1x1x1xf32>
    %44 = vector.shape_cast %16 : vector<1x2x256xf32> to vector<1x1x2x256xf32>
    %cst_13 = arith.constant dense<0.000000e+00> : vector<1xf32>
    %45 = vector.multi_reduction <add>, %44, %cst_13 [1, 2, 3] : vector<1x1x2x256xf32> to vector<1xf32>
    %46 = vector.shape_cast %45 : vector<1xf32> to vector<1x1x1x1xf32>
    %47 = vector.extract %46[0, 0, 0, 0] : f32 from vector<1x1x1x1xf32>
    %cst_14 = arith.constant dense<0.000000e+00> : vector<2x256xf32>
    %48 = vector.multi_reduction <add>, %24, %cst_14 [0] : vector<4x2x256xf32> to vector<2x256xf32>
    %49 = vector.shape_cast %48 : vector<2x256xf32> to vector<1x2x256xf32>
    %cst_15 = arith.constant 1.000000e+00 : f32
    %50 = vector.broadcast %cst_15 : f32 to vector<1x2x256xf32>
    %51 = arith.subf %50, %49 : vector<1x2x256xf32>
    %cst_16 = arith.constant 1.000000e+00 : f32
    %52 = vector.broadcast %cst_16 : f32 to vector<1x2x256xf32>
    %53 = arith.mulf %52, %51 : vector<1x2x256xf32>
    %54 = arith.mulf %53, %51 : vector<1x2x256xf32>
    %55 = arith.mulf %54, %30 : vector<1x2x256xf32>
    %56 = arith.mulf %55, %16 : vector<1x2x256xf32>
    %57 = vector.shape_cast %56 : vector<1x2x256xf32> to vector<1x1x2x256xf32>
    %cst_17 = arith.constant dense<0.000000e+00> : vector<1xf32>
    %58 = vector.multi_reduction <add>, %57, %cst_17 [1, 2, 3] : vector<1x1x2x256xf32> to vector<1xf32>
    %59 = vector.shape_cast %58 : vector<1xf32> to vector<1x1x1x1xf32>
    %60 = vector.extract %59[0, 0, 0, 0] : f32 from vector<1x1x1x1xf32>
    %cst_18 = arith.constant dense<0.000000e+00> : vector<4x2xf32>
    %61 = vector.multi_reduction <add>, %24, %cst_18 [2] : vector<4x2x256xf32> to vector<4x2xf32>
    %62 = vector.shape_cast %61 : vector<4x2xf32> to vector<4x2x1xf32>
    %cst_19 = arith.constant dense<0.000000e+00> : vector<4x1xf32>
    %63 = vector.multi_reduction <add>, %62, %cst_19 [1] : vector<4x2x1xf32> to vector<4x1xf32>
    %cst_20 = arith.constant dense<0.000000e+00> : vector<4x2xf32>
    %64 = vector.multi_reduction <add>, %11, %cst_20 [2] : vector<4x2x256xf32> to vector<4x2xf32>
    %65 = vector.shape_cast %64 : vector<4x2xf32> to vector<4x2x1xf32>
    %cst_21 = arith.constant dense<0.000000e+00> : vector<4x1xf32>
    %66 = vector.multi_reduction <add>, %65, %cst_21 [1] : vector<4x2x1xf32> to vector<4x1xf32>
    %cst_22 = arith.constant dense<0.000000e+00> : vector<4x2xf32>
    %67 = vector.multi_reduction <add>, %23, %cst_22 [2] : vector<4x2x256xf32> to vector<4x2xf32>
    %68 = vector.shape_cast %67 : vector<4x2xf32> to vector<4x2x1xf32>
    %cst_23 = arith.constant dense<0.000000e+00> : vector<4x1xf32>
    %69 = vector.multi_reduction <add>, %68, %cst_23 [1] : vector<4x2x1xf32> to vector<4x1xf32>
    %70 = tpu.iota {dimensions = array<i32: 2>} : vector<1x1x256xi32>
    %c15_i32 = arith.constant 15 : i32
    %71 = vector.broadcast %c15_i32 : i32 to vector<1x1x256xi32>
    %72 = arith.andi %70, %71 : vector<1x1x256xi32>
    %c15_i32_24 = arith.constant 15 : i32
    %73 = vector.broadcast %c15_i32_24 : i32 to vector<1x1x256xi32>
    %74 = arith.cmpi ne, %72, %73 : vector<1x1x256xi32>
    %cst_25 = arith.constant 0.00416666688 : f32
    %cst_26 = arith.constant 0.000000e+00 : f32
    %75 = vector.broadcast %cst_25 : f32 to vector<1x1x256xf32>
    %76 = vector.broadcast %cst_26 : f32 to vector<1x1x256xf32>
    %77 = arith.select %74, %75, %76 : vector<1x1x256xi1>, vector<1x1x256xf32>
    %c240_i32 = arith.constant 240 : i32
    %78 = vector.broadcast %c240_i32 : i32 to vector<1x1x256xi32>
    %79 = arith.cmpi slt, %70, %78 : vector<1x1x256xi32>
    %cst_27 = arith.constant 0.00416666688 : f32
    %cst_28 = arith.constant 0.000000e+00 : f32
    %80 = vector.broadcast %cst_27 : f32 to vector<1x1x256xf32>
    %81 = vector.broadcast %cst_28 : f32 to vector<1x1x256xf32>
    %82 = arith.select %79, %80, %81 : vector<1x1x256xi1>, vector<1x1x256xf32>
    %c255_i32 = arith.constant 255 : i32
    %83 = tpu.dynamic_rotate %11 by %c255_i32 dim 2 : vector<4x2x256xf32>, i32 -> vector<4x2x256xf32>
    %c240_i32_29 = arith.constant 240 : i32
    %84 = tpu.dynamic_rotate %11 by %c240_i32_29 dim 2 : vector<4x2x256xf32>, i32 -> vector<4x2x256xf32>
    %85 = arith.subf %83, %11 : vector<4x2x256xf32>
    %86 = math.absf %85 : vector<4x2x256xf32>
    %87 = vector.broadcast %77 : vector<1x1x256xf32> to vector<4x2x256xf32>
    %88 = arith.mulf %86, %87 : vector<4x2x256xf32>
    %89 = arith.subf %84, %11 : vector<4x2x256xf32>
    %90 = math.absf %89 : vector<4x2x256xf32>
    %91 = vector.broadcast %82 : vector<1x1x256xf32> to vector<4x2x256xf32>
    %92 = arith.mulf %90, %91 : vector<4x2x256xf32>
    %93 = arith.addf %88, %92 : vector<4x2x256xf32>
    %cst_30 = arith.constant dense<0.000000e+00> : vector<4x2xf32>
    %94 = vector.multi_reduction <add>, %93, %cst_30 [2] : vector<4x2x256xf32> to vector<4x2xf32>
    %95 = vector.shape_cast %94 : vector<4x2xf32> to vector<4x2x1xf32>
    %96 = vector.shape_cast %95 : vector<4x2x1xf32> to vector<1x4x2x1xf32>
    %cst_31 = arith.constant dense<0.000000e+00> : vector<1xf32>
    %97 = vector.multi_reduction <add>, %96, %cst_31 [1, 2, 3] : vector<1x4x2x1xf32> to vector<1xf32>
    %98 = vector.shape_cast %97 : vector<1xf32> to vector<1x1x1x1xf32>
    %99 = vector.extract %98[0, 0, 0, 0] : f32 from vector<1x1x1x1xf32>
    %c0_i32_32 = arith.constant 0 : i32
    %100 = arith.cmpi eq, %arg1, %c0_i32_32 : i32
    %101 = arith.extui %100 : i1 to i32
    %c0_i32_33 = arith.constant 0 : i32
    %102 = arith.cmpi ne, %101, %c0_i32_33 : i32
    scf.if %102 {
      %168 = vector.extract_strided_slice %11 {offsets = [0, 0, 0], sizes = [4, 2, 16], strides = [1, 1, 1]} : vector<4x2x256xf32> to vector<4x2x16xf32>
      %c0_62 = arith.constant 0 : index
      %c0_63 = arith.constant 0 : index
      %c0_64 = arith.constant 0 : index
      %169 = vector.load %arg6[%c0_62, %c0_63, %c0_64] : memref<4x2x16xf32, #tpu.memory_space<vmem>>, vector<4x2x16xf32>
      tpu.vector_store %arg6[%c0_62, %c0_63, %c0_64], %168 {strides = array<i32>} : memref<4x2x16xf32, #tpu.memory_space<vmem>>, vector<4x2x16xf32>,
    } else {
    }
    %103 = vector.extract_strided_slice %11 {offsets = [0, 0, 0], sizes = [4, 2, 16], strides = [1, 1, 1]} : vector<4x2x256xf32> to vector<4x2x16xf32>
    %c0_34 = arith.constant 0 : index
    %c0_35 = arith.constant 0 : index
    %c0_36 = arith.constant 0 : index
    %104 = vector.load %arg6[%c0_34, %c0_35, %c0_36] : memref<4x2x16xf32, #tpu.memory_space<vmem>>, vector<4x2x16xf32>
    %105 = arith.subf %103, %104 : vector<4x2x16xf32>
    %106 = math.absf %105 : vector<4x2x16xf32>
    %cst_37 = arith.constant dense<0.000000e+00> : vector<4x2xf32>
    %107 = vector.multi_reduction <add>, %106, %cst_37 [2] : vector<4x2x16xf32> to vector<4x2xf32>
    %108 = vector.shape_cast %107 : vector<4x2xf32> to vector<4x2x1xf32>
    %109 = vector.shape_cast %108 : vector<4x2x1xf32> to vector<1x4x2x1xf32>
    %cst_38 = arith.constant dense<0.000000e+00> : vector<1xf32>
    %110 = vector.multi_reduction <add>, %109, %cst_38 [1, 2, 3] : vector<1x4x2x1xf32> to vector<1xf32>
    %111 = vector.shape_cast %110 : vector<1xf32> to vector<1x1x1x1xf32>
    %112 = vector.extract %111[0, 0, 0, 0] : f32 from vector<1x1x1x1xf32>
    %cst_39 = arith.constant 0.00416666688 : f32
    %113 = arith.mulf %cst_39, %112 : f32
    %114 = arith.addf %99, %113 : f32
    %115 = vector.extract_strided_slice %11 {offsets = [0, 0, 240], sizes = [4, 2, 16], strides = [1, 1, 1]} : vector<4x2x256xf32> to vector<4x2x16xf32>
    %c0_40 = arith.constant 0 : index
    %c0_41 = arith.constant 0 : index
    %c0_42 = arith.constant 0 : index
    %116 = vector.load %arg6[%c0_40, %c0_41, %c0_42] : memref<4x2x16xf32, #tpu.memory_space<vmem>>, vector<4x2x16xf32>
    tpu.vector_store %arg6[%c0_40, %c0_41, %c0_42], %115 {strides = array<i32>} : memref<4x2x16xf32, #tpu.memory_space<vmem>>, vector<4x2x16xf32>,
    %117 = tpu.iota {dimensions = array<i32: 1>} : vector<1x8xi32>
    %c0_i32_43 = arith.constant 0 : i32
    %118 = vector.broadcast %c0_i32_43 : i32 to vector<1x8xi32>
    %119 = arith.cmpi eq, %117, %118 : vector<1x8xi32>
    %cst_44 = arith.constant 0.000000e+00 : f32
    %120 = vector.broadcast %43 : f32 to vector<1x8xf32>
    %121 = vector.broadcast %cst_44 : f32 to vector<1x8xf32>
    %122 = arith.select %119, %120, %121 : vector<1x8xi1>, vector<1x8xf32>
    %c1_i32 = arith.constant 1 : i32
    %123 = vector.broadcast %c1_i32 : i32 to vector<1x8xi32>
    %124 = arith.cmpi eq, %117, %123 : vector<1x8xi32>
    %cst_45 = arith.constant 0.000000e+00 : f32
    %125 = vector.broadcast %47 : f32 to vector<1x8xf32>
    %126 = vector.broadcast %cst_45 : f32 to vector<1x8xf32>
    %127 = arith.select %124, %125, %126 : vector<1x8xi1>, vector<1x8xf32>
    %128 = arith.addf %122, %127 : vector<1x8xf32>
    %c2_i32 = arith.constant 2 : i32
    %129 = vector.broadcast %c2_i32 : i32 to vector<1x8xi32>
    %130 = arith.cmpi eq, %117, %129 : vector<1x8xi32>
    %cst_46 = arith.constant 0.000000e+00 : f32
    %131 = vector.broadcast %60 : f32 to vector<1x8xf32>
    %132 = vector.broadcast %cst_46 : f32 to vector<1x8xf32>
    %133 = arith.select %130, %131, %132 : vector<1x8xi1>, vector<1x8xf32>
    %134 = arith.addf %128, %133 : vector<1x8xf32>
    %c3_i32 = arith.constant 3 : i32
    %135 = vector.broadcast %c3_i32 : i32 to vector<1x8xi32>
    %136 = arith.cmpi eq, %117, %135 : vector<1x8xi32>
    %cst_47 = arith.constant 0.000000e+00 : f32
    %137 = vector.broadcast %114 : f32 to vector<1x8xf32>
    %138 = vector.broadcast %cst_47 : f32 to vector<1x8xf32>
    %139 = arith.select %136, %137, %138 : vector<1x8xi1>, vector<1x8xf32>
    %140 = arith.addf %134, %139 : vector<1x8xf32>
    %c0_48 = arith.constant 0 : index
    %c0_49 = arith.constant 0 : index
    %c0_50 = arith.constant 0 : index
    %c0_51 = arith.constant 0 : index
    %141 = vector.load %arg4[%c0_48, %c0_49, %c0_50, %c0_51] : memref<1x1x1x8xf32, #tpu.memory_space<vmem>>, vector<1x1x1x8xf32>
    %142 = vector.shape_cast %141 : vector<1x1x1x8xf32> to vector<1x8xf32>
    %143 = vector.shape_cast %140 : vector<1x8xf32> to vector<1x1x1x8xf32>
    tpu.vector_store %arg4[%c0_48, %c0_49, %c0_50, %c0_51], %143 {strides = array<i32>} : memref<1x1x1x8xf32, #tpu.memory_space<vmem>>, vector<1x1x1x8xf32>,
    %144 = tpu.iota {dimensions = array<i32: 1>} : vector<4x8xi32>
    %c0_i32_52 = arith.constant 0 : i32
    %145 = vector.broadcast %c0_i32_52 : i32 to vector<4x8xi32>
    %146 = arith.cmpi eq, %144, %145 : vector<4x8xi32>
    %cst_53 = arith.constant 0.000000e+00 : f32
    %147 = vector.shape_cast %63 : vector<4x1xf32> to vector<4x1xf32>
    %148 = vector.broadcast %147 : vector<4x1xf32> to vector<4x8xf32>
    %149 = vector.broadcast %cst_53 : f32 to vector<4x8xf32>
    %150 = arith.select %146, %148, %149 : vector<4x8xi1>, vector<4x8xf32>
    %c1_i32_54 = arith.constant 1 : i32
    %151 = vector.broadcast %c1_i32_54 : i32 to vector<4x8xi32>
    %152 = arith.cmpi eq, %144, %151 : vector<4x8xi32>
    %cst_55 = arith.constant 0.000000e+00 : f32
    %153 = vector.shape_cast %66 : vector<4x1xf32> to vector<4x1xf32>
    %154 = vector.broadcast %153 : vector<4x1xf32> to vector<4x8xf32>
    %155 = vector.broadcast %cst_55 : f32 to vector<4x8xf32>
    %156 = arith.select %152, %154, %155 : vector<4x8xi1>, vector<4x8xf32>
    %157 = arith.addf %150, %156 : vector<4x8xf32>
    %c2_i32_56 = arith.constant 2 : i32
    %158 = vector.broadcast %c2_i32_56 : i32 to vector<4x8xi32>
    %159 = arith.cmpi eq, %144, %158 : vector<4x8xi32>
    %cst_57 = arith.constant 0.000000e+00 : f32
    %160 = vector.shape_cast %69 : vector<4x1xf32> to vector<4x1xf32>
    %161 = vector.broadcast %160 : vector<4x1xf32> to vector<4x8xf32>
    %162 = vector.broadcast %cst_57 : f32 to vector<4x8xf32>
    %163 = arith.select %159, %161, %162 : vector<4x8xi1>, vector<4x8xf32>
    %164 = arith.addf %157, %163 : vector<4x8xf32>
    %c0_58 = arith.constant 0 : index
    %c0_59 = arith.constant 0 : index
    %c0_60 = arith.constant 0 : index
    %c0_61 = arith.constant 0 : index
    %165 = vector.load %arg5[%c0_58, %c0_59, %c0_60, %c0_61] : memref<1x1x4x8xf32, #tpu.memory_space<vmem>>, vector<1x1x4x8xf32>
    %166 = vector.shape_cast %165 : vector<1x1x4x8xf32> to vector<4x8xf32>
    %167 = vector.shape_cast %164 : vector<4x8xf32> to vector<1x1x4x8xf32>
    tpu.vector_store %arg5[%c0_58, %c0_59, %c0_60, %c0_61], %167 {strides = array<i32>} : memref<1x1x4x8xf32, #tpu.memory_space<vmem>>, vector<1x1x4x8xf32>,
    return
  }
  func.func @transform_0(%arg0: i32, %arg1: i32) -> (i32, i32, i32) {
    %c0_i32 = arith.constant 0 : i32
    %c0_i32_0 = arith.constant 0 : i32
    return %c0_i32, %arg0, %arg1 : i32, i32, i32
  }
  func.func @transform_1(%arg0: i32, %arg1: i32) -> (i32, i32, i32) {
    %c0_i32 = arith.constant 0 : i32
    %c0_i32_0 = arith.constant 0 : i32
    return %c0_i32, %arg0, %arg1 : i32, i32, i32
  }
  func.func @transform_2(%arg0: i32, %arg1: i32) -> (i32, i32, i32, i32) {
    %c0_i32 = arith.constant 0 : i32
    %c0_i32_0 = arith.constant 0 : i32
    %c0_i32_1 = arith.constant 0 : i32
    return %arg0, %arg1, %c0_i32, %c0_i32_0 : i32, i32, i32, i32
  }
  func.func @transform_3(%arg0: i32, %arg1: i32) -> (i32, i32, i32, i32) {
    %c0_i32 = arith.constant 0 : i32
    %c0_i32_0 = arith.constant 0 : i32
    %c0_i32_1 = arith.constant 0 : i32
    return %arg0, %arg1, %c0_i32, %c0_i32_0 : i32, i32, i32, i32
  }
}

</mosaic_0001>

<bundles_post_ra>
// kernel: advanced_loss.1
= control target key start
LH: loop header
LB: loop body
LE: loop exit
PB: predicated region body
PF: predicated region fallthrough
CT: control target
= control target key end

     0   :  { %vm18_vm0 = vcmask 1041408   ;;  %vm19_vm1 = vcmask 1043458   ;;  %v1506_v29 = vmov 0.0   ;;  %s937_s21 = smov 112   ;;  %vm768_vm8 = vcmask 123904   ;;  %s938_s22 = smov 16   ;;  %s1502_s0 = inlined_call_operand.vmem [shape: f32[4,2,256], index: 0, kind: input, shape index: {}]   ;;  %s1503_s1 = inlined_call_operand.vmem [shape: s32[1,2,256], index: 1, kind: input, shape index: {}]   ;;  %s1504_s3 = inlined_call_operand.vmem [shape: f32[1,1,4,8], index: 3, kind: output, shape index: {1}]   ;;  %s1505_s2 = inlined_call_operand.vmem [shape: f32[1,1,1,8], index: 2, kind: output, shape index: {0}]  }
   0x1   :  { %v13_v0 = vld [vmem:[%s1502_s0] sm:$0xf]  ;;  %v14_v1 = vld [vmem:[%s1502_s0 + $0x4] sm:$0xf]  ;;  %v15_v2 = vld [vmem:[%s1502_s0 + $0x8] sm:$0xf] }
   0x2   :  { %v16_v3 = vld [vmem:[%s1502_s0 + $0xc] sm:$0xf]  ;;  %vm20_vm2 = vmor %vm19_vm1, %vm18_vm0  ;;  %v986_v18 = vld [vmem:[%s1503_s1] sm:$0xf]  ;;  %s936_s1 = smov 127   ;;  %vm747_vm14 = vcmask 1024  }
   0x3   :  { %v21_v4 = vsel %vm20_vm2, %v13_v0, -inf  ;;  %v22_v5 = vsel %vm20_vm2, %v14_v1, -inf  ;;  %v23_v6 = vsel %vm20_vm2, %v15_v2, -inf  ;;  %v24_v7 = vsel %vm20_vm2, %v16_v3, -inf }
   0x4   :  { %v25_v8 = vmax.f32 %v21_v4, %v22_v5  ;;  %v26_v9 = vmax.f32 %v23_v6, %v24_v7  ;;  %vm94_vm3 = vcmp.ge.s32.totalorder %v986_v18, 0  ;;  %vm862_vm15 = vcmask 1041409  }
   0x5   :  { %v97_v22 = vsel %vm94_vm3, %v986_v18, 0  ;;  %vm864_vm1 = vcmask 1042434  }
   0x6   :  { %v27_v10 = vmax.f32 %v25_v8, %v26_v9  ;;  %vm98_vm4 = vcmp.eq.s32.totalorder %v97_v22, 0  ;;  %vm99_vm5 = vcmp.eq.s32.totalorder %v97_v22, 1  ;;  %vm100_vm6 = vcmp.eq.s32.totalorder %v97_v22, 2 }
   0x7   :  { %v1006_v30 = vsel %vm98_vm4, 1.0, %v1506_v29  ;;  %v1009_v31 = vsel %vm99_vm5, 1.0, %v1506_v29  ;;  %vm101_vm7 = vcmp.eq.s32.totalorder %v97_v22, 3  ;;  %v1021_v44 = vsel %vm100_vm6, 1.0, %v1506_v29 }
   0x8   :  { %v972_v11 = vsub.f32 %v13_v0, %v27_v10  ;;  %v974_v12 = vsub.f32 %v14_v1, %v27_v10  ;;  %v978_v15 = vsub.f32 %v15_v2, %v27_v10  ;;  %v980_v16 = vsub.f32 %v16_v3, %v27_v10 }
   0x9   :  { %v1024_v45 = vsel %vm101_vm7, 1.0, %v1506_v29  ;;  %v900_v9 = vsel %vm94_vm3, 1.0, %v1506_v29  ;;  %vm890_vm5 = vcmask 60416   ;;  %vm856_vm7 = vcmask 57344  }
   0xa   :  { %v32_v13 = vmul.f32 1.442695, %v972_v11  ;;  %v34_v14 = vmul.f32 1.442695, %v974_v12  ;;  %v36_v17 = vmul.f32 1.442695, %v978_v15  ;;  %v114_v32 = vmul.f32 %v1006_v30, %v972_v11 }
   0xb   :  { %v38_v19 = vmul.f32 1.442695, %v980_v16  ;;  %v115_v35 = vmul.f32 %v1009_v31, %v974_v12  ;;  %v116_v48 = vmul.f32 %v1021_v44, %v978_v15  ;;  %v117_v51 = vmul.f32 %v1024_v45, %v980_v16 }
   0xc   :  { %919 = vpow2.f32 %v32_v13 }
   0xd   :  { %921 = vpow2.f32 %v34_v14 }
   0xe   :  { %923 = vpow2.f32 %v36_v17 }
   0xf   :  { %925 = vpow2.f32 %v38_v19 }
  0x12   :  { %v989_v20 = vpop.eup %919 }
  0x13   :  { %v991_v21 = vpop.eup %921  ;;  %44 = vst [vmem:[#allocation1] ss:$4 sm:$0xff] %v989_v20 }
  0x14   :  { %48 = vst [vmem:[#allocation1 + $0x20] ss:$4 sm:$0xff] %v991_v21  ;;  %v999_v23 = vpop.eup %923 }
  0x15   :  { %v1001_v24 = vpop.eup %925 }
  0x1a   :  { %v45_v25 = vld.sshfl [vmem:[#allocation1] sm:$0xff pattern:$0x73625140]  ;;  %v46_v26 = vld.sshfl [vmem:[#allocation1 + $0x8] sm:$0xff pattern:$0x73625140] }
  0x1b   :  { %v49_v27 = vld.sshfl [vmem:[#allocation1 + $0x20] sm:$0xff pattern:$0x73625140]  ;;  %v50_v28 = vld.sshfl [vmem:[#allocation1 + $0x28] sm:$0xff pattern:$0x73625140] }
  0x1c   :  { %51 = vst [vmem:[#allocation1] ss:$4 sm:$0xff] %v999_v23  ;;  %v72_v33 = vsel %vm18_vm0, %v46_v26, 0.0  ;;  %v73_v34 = vsel %vm18_vm0, %v50_v28, 0.0  ;;  %v65_v41 = vsel %vm18_vm0, %v45_v25, 0.0  ;;  %v66_v42 = vsel %vm18_vm0, %v49_v27, 0.0 }
  0x1d   :  { %54 = vst [vmem:[#allocation1 + $0x20] ss:$4 sm:$0xff] %v1001_v24  ;;  %v74_v40 = vadd.f32 %v73_v34, %v72_v33  ;;  %v67_v46 = vadd.f32 %v66_v42, %v65_v41 }
  0x23   :  { %v52_v36 = vld.sshfl [vmem:[#allocation1] sm:$0xff pattern:$0x73625140]  ;;  %v53_v37 = vld.sshfl [vmem:[#allocation1 + $0x8] sm:$0xff pattern:$0x73625140] }
  0x24   :  { %v55_v38 = vld.sshfl [vmem:[#allocation1 + $0x20] sm:$0xff pattern:$0x73625140]  ;;  %v56_v39 = vld.sshfl [vmem:[#allocation1 + $0x28] sm:$0xff pattern:$0x73625140] }
  0x25   :  { %122 = vst [vmem:[#allocation1] ss:$4 sm:$0xff] %v114_v32  ;;  %v75_v43 = vsel %vm18_vm0, %v53_v37, 0.0  ;;  %v68_v49 = vsel %vm18_vm0, %v52_v36, 0.0  ;;  %v77_v50 = vsel %vm18_vm0, %v56_v39, 0.0  ;;  %v70_v58 = vsel %vm18_vm0, %v55_v38, 0.0 }
  0x26   :  { %126 = vst [vmem:[#allocation1 + $0x20] ss:$4 sm:$0xff] %v115_v35  ;;  %v76_v47 = vadd.f32 %v75_v43, %v74_v40  ;;  %v69_v56 = vadd.f32 %v68_v49, %v67_v46 }
  0x28   :  { %v1040_v57 = vadd.f32 %v77_v50, %v76_v47  ;;  %v1043_v59 = vadd.f32 %v70_v58, %v69_v56 }
  0x2a   :  { %927 = vrcp.f32 %v1040_v57 }
  0x2b   :  { %929 = vrcp.f32 %v1043_v59 }
  0x2c   :  { %v1032_v52 = vld.sshfl [vmem:[#allocation1] sm:$0xff pattern:$0x73625140]  ;;  %v1034_v53 = vld.sshfl [vmem:[#allocation1 + $0x8] sm:$0xff pattern:$0x73625140]  ;;  %931 = vlog2.f32 %v1043_v59 }
  0x2d   :  { %v1036_v54 = vld.sshfl [vmem:[#allocation1 + $0x20] sm:$0xff pattern:$0x73625140]  ;;  %v1038_v55 = vld.sshfl [vmem:[#allocation1 + $0x28] sm:$0xff pattern:$0x73625140]  ;;  %933 = vlog2.f32 %v1040_v57 }
  0x2e   :  { %129 = vst [vmem:[#allocation1] ss:$4 sm:$0xff] %v116_v48 }
  0x2f   :  { %132 = vst [vmem:[#allocation1 + $0x20] ss:$4 sm:$0xff] %v117_v51 }
  0x30   :  { %v928_v0 = vpop.eup %927 }
  0x31   :  { %v83_v1 = vrot.slane %v928_v0, 6  ;;  %v930_v2 = vpop.eup %929 }
  0x32   :  { %v932_v59 = vpop.eup %931 }
  0x33   :  { %v84_v5 = vsel %vm18_vm0, %v930_v2, %v83_v1 }
  0x34   :  { %v1069_v8 = vmul.f32 %v991_v21, %v84_v5  ;;  %v1096_v21 = vmul.f32 %v989_v20, %v84_v5  ;;  %v1107_v27 = vmul.f32 %v999_v23, %v84_v5 }
  0x35   :  { %v1046_v60 = vld.sshfl [vmem:[#allocation1] sm:$0xff pattern:$0x73625140]  ;;  %v1048_v61 = vld.sshfl [vmem:[#allocation1 + $0x8] sm:$0xff pattern:$0x73625140] }
  0x36   :  { %v1051_v62 = vld.sshfl [vmem:[#allocation1 + $0x20] sm:$0xff pattern:$0x73625140]  ;;  %v1053_v63 = vld.sshfl [vmem:[#allocation1 + $0x28] sm:$0xff pattern:$0x73625140]  ;;  %v111_v10 = vmul.f32 %v1009_v31, %v1069_v8  ;;  %v112_v20 = vmul.f32 %v1021_v44, %v1107_v27 }
  0x37   :  { %161 = vst [vmem:[#allocation1] ss:$4 sm:$0xff] %v972_v11 }
  0x38   :  { %165 = vst [vmem:[#allocation1 + $0x20] ss:$4 sm:$0xff] %v974_v12 }
  0x39   :  { %770 = vst.msk [vmem:[#allocation2 + $0x2] sm:$0x3] %vm768_vm8, %v1069_v8 }
  0x3a   :  { %769 = vst.msk [vmem:[#allocation2] sm:$0x3] %vm768_vm8, %v1096_v21 }
  0x3b   :  { %771 = vst.msk [vmem:[#allocation2 + $0x4] sm:$0x3] %vm768_vm8, %v1107_v27 }
  0x3e   :  { %v1057_v3 = vld.sshfl [vmem:[#allocation1] sm:$0xff pattern:$0x73625140]  ;;  %v1059_v4 = vld.sshfl [vmem:[#allocation1 + $0x8] sm:$0xff pattern:$0x73625140] }
  0x3f   :  { %v1062_v6 = vld.sshfl [vmem:[#allocation1 + $0x20] sm:$0xff pattern:$0x73625140]  ;;  %v1064_v7 = vld.sshfl [vmem:[#allocation1 + $0x28] sm:$0xff pattern:$0x73625140] }
  0x40   :  { %168 = vst [vmem:[#allocation1] ss:$4 sm:$0xff] %v978_v15  ;;  %v1085_v15 = vmul.f32 %v1001_v24, %v84_v5  ;;  %v110_v24 = vmul.f32 %v1006_v30, %v1096_v21  ;;  %v183_v57 = vsel %vm18_vm0, %v1062_v6, 0.0  ;;  %v148_v6 = vsel %vm18_vm0, %v1051_v62, 0.0 }
  0x41   :  { %171 = vst [vmem:[#allocation1 + $0x20] ss:$4 sm:$0xff] %v980_v16 }
  0x42   :  { %v113_v16 = vmul.f32 %v1024_v45, %v1085_v15  ;;  %772 = vst.msk [vmem:[#allocation2 + $0x6] sm:$0x3] %vm768_vm8, %v1085_v15 }
  0x47   :  { %v1076_v11 = vld.sshfl [vmem:[#allocation1] sm:$0xff pattern:$0x73625140]  ;;  %v1078_v12 = vld.sshfl [vmem:[#allocation1 + $0x8] sm:$0xff pattern:$0x73625140] }
  0x48   :  { %v1080_v13 = vld.sshfl [vmem:[#allocation1 + $0x20] sm:$0xff pattern:$0x73625140]  ;;  %v1082_v14 = vld.sshfl [vmem:[#allocation1 + $0x28] sm:$0xff pattern:$0x73625140] }
  0x49   :  { %209 = vst [vmem:[#allocation1] ss:$4 sm:$0xff] %v900_v9  ;;  %v194_v62 = vsel %vm18_vm0, %v1082_v14, 0.0 }
  0x4a   :  { %253 = vst [vmem:[#allocation1 + $0x20] ss:$4 sm:$0xff] %v111_v10 }
  0x50   :  { %v1089_v17 = vld.sshfl [vmem:[#allocation1] sm:$0xff pattern:$0x73625140]  ;;  %v1091_v18 = vld.sshfl [vmem:[#allocation1 + $0x8] sm:$0xff pattern:$0x73625140] }
  0x51   :  { %1508 = vst [vmem:[#allocation3_spill] sm:$0xff] %v1089_v17  ;;  %v1093_v19 = vld.sshfl [vmem:[#allocation1 + $0x20] sm:$0xff pattern:$0x73625140] }
  0x52   :  { %1509 = vst [vmem:[#allocation4_spill] sm:$0xff] %v1091_v18  ;;  %v1098_v22 = vld.sshfl [vmem:[#allocation1 + $0x28] sm:$0xff pattern:$0x73625140] }
  0x53   :  { %228 = vst [vmem:[#allocation1] ss:$4 sm:$0xff] %v900_v9 }
  0x54   :  { %259 = vst [vmem:[#allocation1 + $0x20] ss:$4 sm:$0xff] %v113_v16 }
  0x5a   :  { %v1102_v25 = vld.sshfl [vmem:[#allocation1] sm:$0xff pattern:$0x73625140]  ;;  %v1104_v26 = vld.sshfl [vmem:[#allocation1 + $0x8] sm:$0xff pattern:$0x73625140] }
  0x5b   :  { %249 = vst [vmem:[#allocation1] ss:$4 sm:$0xff] %v110_v24  ;;  %v1109_v28 = vld.sshfl [vmem:[#allocation1 + $0x20] sm:$0xff pattern:$0x73625140] }
  0x5c   :  { %v1111_v32 = vld.sshfl [vmem:[#allocation1 + $0x28] sm:$0xff pattern:$0x73625140]  ;;  %v275_v14 = vsel %vm18_vm0, %v1109_v28, 0.0 }
  0x5d   :  { %1510 = vst [vmem:[#allocation5_spill] sm:$0xff] %v1111_v32 }
  0x5e   :  { %313 = vst [vmem:[#allocation1 + $0x20] ss:$4 sm:$0xff] %v111_v10 }
  0x62   :  { %v1115_v33 = vld.sshfl [vmem:[#allocation1] sm:$0xff pattern:$0x73625140]  ;;  %v1117_v34 = vld.sshfl [vmem:[#allocation1 + $0x8] sm:$0xff pattern:$0x73625140] }
  0x63   :  { %256 = vst [vmem:[#allocation1] ss:$4 sm:$0xff] %v112_v20 }
  0x65   :  { %v1119_v35 = vld.sshfl [vmem:[#allocation1 + $0x20] sm:$0xff pattern:$0x73625140]  ;;  %v1121_v36 = vld.sshfl [vmem:[#allocation1 + $0x28] sm:$0xff pattern:$0x73625140] }
  0x66   :  { %1511 = vst [vmem:[#allocation6_spill] sm:$0xff] %v1119_v35 }
  0x67   :  { %1512 = vst [vmem:[#allocation7_spill] sm:$0xff] %v1121_v36 }
  0x68   :  { %319 = vst [vmem:[#allocation1 + $0x20] ss:$4 sm:$0xff] %v113_v16 }
  0x6a   :  { %v1123_v23 = vld.sshfl [vmem:[#allocation1] sm:$0xff pattern:$0x73625140]  ;;  %v1125_v37 = vld.sshfl [vmem:[#allocation1 + $0x8] sm:$0xff pattern:$0x73625140] }
  0x6b   :  { %1513 = vst [vmem:[#allocation8_spill] sm:$0xff] %v1125_v37 }
  0x6c   :  { %290 = vst [vmem:[#allocation1] ss:$4 sm:$0xff] %v900_v9 }
  0x6f   :  { %v1127_v38 = vld.sshfl [vmem:[#allocation1 + $0x20] sm:$0xff pattern:$0x73625140]  ;;  %v1129_v39 = vld.sshfl [vmem:[#allocation1 + $0x28] sm:$0xff pattern:$0x73625140] }
  0x70   :  { %1514 = vst [vmem:[#allocation9_spill] sm:$0xff] %v1127_v38  ;;  %v773_v38 = vld [vmem:[#allocation2] sm:$0x3] }
  0x71   :  { %1515 = vst [vmem:[#allocation10_spill] sm:$0xff] %v1129_v39 }
  0x72   :  { %386 = vst [vmem:[#allocation1 + $0x20] ss:$4 sm:$0xff] %v1069_v8 }
  0x73   :  { %v1132_v40 = vld.sshfl [vmem:[#allocation1] sm:$0xff pattern:$0x73625140]  ;;  %v1134_v41 = vld.sshfl [vmem:[#allocation1 + $0x8] sm:$0xff pattern:$0x73625140] }
  0x74   :  { %1516 = vst [vmem:[#allocation11_spill] sm:$0xff] %v1132_v40 }
  0x75   :  { %1517 = vst [vmem:[#allocation12_spill] sm:$0xff] %v1134_v41 }
  0x76   :  { %309 = vst [vmem:[#allocation1] ss:$4 sm:$0xff] %v110_v24 }
  0x79   :  { %v1136_v42 = vld.sshfl [vmem:[#allocation1 + $0x20] sm:$0xff pattern:$0x73625140]  ;;  %v1138_v43 = vld.sshfl [vmem:[#allocation1 + $0x28] sm:$0xff pattern:$0x73625140] }
  0x7a   :  { %1518 = vst [vmem:[#allocation13_spill] sm:$0xff] %v1136_v42 }
  0x7b   :  { %1519 = vst [vmem:[#allocation14_spill] sm:$0xff] %v1138_v43 }
  0x7c   :  { %392 = vst [vmem:[#allocation1 + $0x20] ss:$4 sm:$0xff] %v1085_v15 }
  0x7d   :  { %v1141_v46 = vld.sshfl [vmem:[#allocation1] sm:$0xff pattern:$0x73625140]  ;;  %v1143_v47 = vld.sshfl [vmem:[#allocation1 + $0x8] sm:$0xff pattern:$0x73625140] }
  0x7e   :  { %1520 = vst [vmem:[#allocation15_spill] sm:$0xff] %v1141_v46 }
  0x7f   :  { %1521 = vst [vmem:[#allocation16_spill] sm:$0xff] %v1143_v47  ;;  %v777_v47 = vsub.f32 %v1096_v21, %v773_v38 }
  0x80   :  { %316 = vst [vmem:[#allocation1] ss:$4 sm:$0xff] %v112_v20 }
  0x81   :  { %v781_v40 = vand.u32 2147483647, %v777_v47 }
  0x83   :  { %v1145_v48 = vld.sshfl [vmem:[#allocation1 + $0x20] sm:$0xff pattern:$0x73625140]  ;;  %v1147_v49 = vld.sshfl [vmem:[#allocation1 + $0x28] sm:$0xff pattern:$0x73625140] }
  0x84   :  { %1522 = vst [vmem:[#allocation17_spill] sm:$0xff] %v1145_v48  ;;  %v786_v38 = vsel %vm768_vm8, %v781_v40, 0.0 }
  0x85   :  { %1523 = vst [vmem:[#allocation18_spill] sm:$0xff] %v1147_v49 }
  0x86   :  { %459 = vst [vmem:[#allocation1 + $0x20] ss:$4 sm:$0xff] %v1009_v31 }
  0x87   :  { %v1150_v50 = vld.sshfl [vmem:[#allocation1] sm:$0xff pattern:$0x73625140]  ;;  %v1152_v51 = vld.sshfl [vmem:[#allocation1 + $0x8] sm:$0xff pattern:$0x73625140] }
  0x88   :  { %1524 = vst [vmem:[#allocation19_spill] sm:$0xff] %v1150_v50 }
  0x89   :  { %1525 = vst [vmem:[#allocation20_spill] sm:$0xff] %v1152_v51 }
  0x8a   :  { %382 = vst [vmem:[#allocation1] ss:$4 sm:$0xff] %v1096_v21 }
  0x8d   :  { %v1155_v56 = vld.sshfl [vmem:[#allocation1 + $0x20] sm:$0xff pattern:$0x73625140]  ;;  %v1157_v58 = vld.sshfl [vmem:[#allocation1 + $0x28] sm:$0xff pattern:$0x73625140] }
  0x8e   :  { %1526 = vst [vmem:[#allocation21_spill] sm:$0xff] %v1155_v56 }
  0x8f   :  { %1527 = vst [vmem:[#allocation22_spill] sm:$0xff] %v1157_v58 }
  0x90   :  { %465 = vst [vmem:[#allocation1 + $0x20] ss:$4 sm:$0xff] %v1024_v45 }
  0x91   :  { %v1160_v0 = vld.sshfl [vmem:[#allocation1] sm:$0xff pattern:$0x73625140]  ;;  %v1162_v1 = vld.sshfl [vmem:[#allocation1 + $0x8] sm:$0xff pattern:$0x73625140] }
  0x92   :  { %1528 = vst [vmem:[#allocation23_spill] sm:$0xff] %v1160_v0 }
  0x93   :  { %1529 = vst [vmem:[#allocation24_spill] sm:$0xff] %v1162_v1 }
  0x94   :  { %389 = vst [vmem:[#allocation1] ss:$4 sm:$0xff] %v1107_v27 }
  0x97   :  { %v1165_v2 = vld.sshfl [vmem:[#allocation1 + $0x20] sm:$0xff pattern:$0x73625140]  ;;  %v1167_v31 = vld.sshfl [vmem:[#allocation1 + $0x28] sm:$0xff pattern:$0x73625140] }
  0x98   :  { %1530 = vst [vmem:[#allocation25_spill] sm:$0xff] %v1165_v2 }
  0x99   :  { %1531 = vst [vmem:[#allocation26_spill] sm:$0xff] %v1167_v31 }
  0x9a   :  { %541 = vst [vmem:[#allocation1 + $0x20] ss:$4 sm:$0xff] %v1069_v8 }
  0x9b   :  { %v1170_v5 = vld.sshfl [vmem:[#allocation1] sm:$0xff pattern:$0x73625140]  ;;  %v1172_v9 = vld.sshfl [vmem:[#allocation1 + $0x8] sm:$0xff pattern:$0x73625140] }
  0x9c   :  { %1532 = vst [vmem:[#allocation27_spill] sm:$0xff] %v1170_v5 }
  0x9d   :  { %1533 = vst [vmem:[#allocation28_spill] sm:$0xff] %v1172_v9  ;;  %v524_v9 = vlaneseq }
  0x9e   :  { %455 = vst [vmem:[#allocation1] ss:$4 sm:$0xff] %v1006_v30 }
  0xa1   :  { %v543_v10 = vld.sshfl [vmem:[#allocation1 + $0x28] sm:$0xff pattern:$0x73625140]  ;;  %v542_v45 = vld.sshfl [vmem:[#allocation1 + $0x20] sm:$0xff pattern:$0x73625140] }
  0xa2   :  { %568 = vrot.lane.b32.xlu1 %v543_v10, %s936_s1  ;;  %560 = vrot.lane.b32.xlu0 %v542_v45, %s936_s1  ;;  %547 = vst [vmem:[#allocation1 + $0x20] ss:$4 sm:$0xff] %v1085_v15 }
  0xa5   :  { %v1178_v16 = vld.sshfl [vmem:[#allocation1] sm:$0xff pattern:$0x73625140]  ;;  %v1180_v24 = vld.sshfl [vmem:[#allocation1 + $0x8] sm:$0xff pattern:$0x73625140] }
  0xa6   :  { %1534 = vst [vmem:[#allocation29_spill] sm:$0xff] %v1178_v16 }
  0xa7   :  { %1535 = vst [vmem:[#allocation30_spill] sm:$0xff] %v1180_v24 }
  0xa8   :  { %462 = vst [vmem:[#allocation1] ss:$4 sm:$0xff] %v1021_v44 }
  0xa9   :  { %v548_v20 = vld.sshfl [vmem:[#allocation1 + $0x20] sm:$0xff pattern:$0x73625140]  ;;  %v549_v29 = vld.sshfl [vmem:[#allocation1 + $0x28] sm:$0xff pattern:$0x73625140] }
  0xaa   :  { %564 = vrot.lane.b32.xlu0 %v548_v20, %s936_s1  ;;  %587 = vst [vmem:[#allocation1 + $0x20] ss:$4 sm:$0xff] %v1069_v8 }
  0xaf   :  { %v1185_v30 = vld.sshfl [vmem:[#allocation1] sm:$0xff pattern:$0x73625140]  ;;  %v1187_v31 = vld.sshfl [vmem:[#allocation1 + $0x8] sm:$0xff pattern:$0x73625140] }
  0xb0   :  { %1536 = vst [vmem:[#allocation31_spill] sm:$0xff] %v1185_v30 }
  0xb1   :  { %1537 = vst [vmem:[#allocation32_spill] sm:$0xff] %v1187_v31  ;;  %v589_v10 = vld.sshfl [vmem:[#allocation1 + $0x28] sm:$0xff pattern:$0x73625140] }
  0xb2   :  { %537 = vst [vmem:[#allocation1] ss:$4 sm:$0xff] %v1096_v21  ;;  %v588_v45 = vld.sshfl [vmem:[#allocation1 + $0x20] sm:$0xff pattern:$0x73625140]  ;;  %614 = vrot.lane.b32.xlu1 %v589_v10, %s937_s21 }
  0xb3   :  { %606 = vrot.lane.b32.xlu2 %v588_v45, %s937_s21  ;;  %593 = vst [vmem:[#allocation1 + $0x20] ss:$4 sm:$0xff] %v1085_v15 }
  0xb9   :  { %v539_v44 = vld.sshfl [vmem:[#allocation1 + $0x8] sm:$0xff pattern:$0x73625140]  ;;  %v538_v2 = vld.sshfl [vmem:[#allocation1] sm:$0xff pattern:$0x73625140] }
  0xba   :  { %558 = vrot.lane.b32.xlu0 %v538_v2, %s936_s1  ;;  %544 = vst [vmem:[#allocation1] ss:$4 sm:$0xff] %v1107_v27  ;;  %v595_v20 = vld.sshfl [vmem:[#allocation1 + $0x28] sm:$0xff pattern:$0x73625140]  ;;  %566 = vrot.lane.b32.xlu1 %v539_v44, %s936_s1 }
  0xbb   :  { %v594_v24 = vld.sshfl [vmem:[#allocation1 + $0x20] sm:$0xff pattern:$0x73625140] }
  0xbc   :  { %633 = vst [vmem:[#allocation1 + $0x20] ss:$4 sm:$0xff] %v1069_v8 }
  0xc1   :  { %v546_v31 = vld.sshfl [vmem:[#allocation1 + $0x8] sm:$0xff pattern:$0x73625140]  ;;  %v545_v30 = vld.sshfl [vmem:[#allocation1] sm:$0xff pattern:$0x73625140] }
  0xc2   :  { %570 = vrot.lane.b32.xlu0 %v546_v31, %s936_s1  ;;  %583 = vst [vmem:[#allocation1] ss:$4 sm:$0xff] %v1096_v21  ;;  %562 = vrot.lane.b32.xlu2 %v545_v30, %s936_s1 }
  0xc3   :  { %v634_v31 = vld.sshfl [vmem:[#allocation1 + $0x20] sm:$0xff pattern:$0x73625140]  ;;  %v635_v44 = vld.sshfl [vmem:[#allocation1 + $0x28] sm:$0xff pattern:$0x73625140] }
  0xc4   :  { %639 = vst [vmem:[#allocation1 + $0x20] ss:$4 sm:$0xff] %v1085_v15 }
  0xc9   :  { %v585_v10 = vld.sshfl [vmem:[#allocation1 + $0x8] sm:$0xff pattern:$0x73625140]  ;;  %v584_v45 = vld.sshfl [vmem:[#allocation1] sm:$0xff pattern:$0x73625140] }
  0xca   :  { %612 = vrot.lane.b32.xlu0 %v585_v10, %s937_s21  ;;  %590 = vst [vmem:[#allocation1] ss:$4 sm:$0xff] %v1107_v27  ;;  %604 = vrot.lane.b32.xlu2 %v584_v45, %s937_s21 }
  0xcb   :  { %v1204_v30 = vld.sshfl [vmem:[#allocation1 + $0x20] sm:$0xff pattern:$0x73625140]  ;;  %v1206_v10 = vld.sshfl [vmem:[#allocation1 + $0x28] sm:$0xff pattern:$0x73625140] }
  0xcc   :  { %678 = vst [vmem:[#allocation1 + $0x20] ss:$4 sm:$0xff] %v1069_v8 }
  0xd1   :  { %v591_v2 = vld.sshfl [vmem:[#allocation1] sm:$0xff pattern:$0x73625140]  ;;  %v592_v16 = vld.sshfl [vmem:[#allocation1 + $0x8] sm:$0xff pattern:$0x73625140] }
  0xd2   :  { %608 = vrot.lane.b32.xlu1 %v591_v2, %s937_s21  ;;  %618 = vrot.lane.b32.xlu0 %v595_v20, %s937_s21  ;;  %629 = vst [vmem:[#allocation1] ss:$4 sm:$0xff] %v1096_v21 }
  0xd3   :  { %616 = vrot.lane.b32.xlu2 %v592_v16, %s937_s21  ;;  %v680_v20 = vld.sshfl [vmem:[#allocation1 + $0x28] sm:$0xff pattern:$0x73625140] }
  0xd9   :  { %v1218_v49 = vld.sshfl [vmem:[#allocation1] sm:$0xff pattern:$0x73625140]  ;;  %v1220_v48 = vld.sshfl [vmem:[#allocation1 + $0x8] sm:$0xff pattern:$0x73625140] }
  0xda   :  { %572 = vrot.lane.b32.xlu1 %v549_v29, %s936_s1  ;;  %v774_v29 = vld [vmem:[#allocation2 + $0x2] sm:$0x3]  ;;  %636 = vst [vmem:[#allocation1] ss:$4 sm:$0xff] %v1107_v27 }
  0xdb   :  { %610 = vrot.lane.b32.xlu2 %v594_v24, %s937_s21  ;;  %v778_v16 = vsub.f32 %v1069_v8, %v774_v29  ;;  %v679_v24 = vld.sshfl [vmem:[#allocation1 + $0x20] sm:$0xff pattern:$0x73625140]  ;;  %v1227_v29 = vand.u32 127, %v524_v9 }
  0xdc   :  { %684 = vst [vmem:[#allocation1 + $0x20] ss:$4 sm:$0xff] %v1085_v15 }
  0xdd   :  { %v782_v45 = vand.u32 2147483647, %v778_v16  ;;  %vm574_vm9 = vcmp.lt.s32.totalorder %v1227_v29, 127  ;;  %v527_v9 = vand.u32 15, %v1227_v29  ;;  %vm620_vm10 = vcmp.lt.s32.totalorder %v1227_v29, 112 }
  0xde   :  { %vm844_vm2 = vcmp.eq.s32.totalorder %v1227_v29, 1  ;;  %vm841_vm3 = vcmp.eq.s32.totalorder %v1227_v29, 0  ;;  %vm848_vm4 = vcmp.eq.s32.totalorder %v1227_v29, 2  ;;  %vm852_vm6 = vcmp.eq.s32.totalorder %v1227_v29, 3 }
  0xdf   :  { %v789_v2 = vsel %vm768_vm8, %v782_v45, 0.0  ;;  %vm529_vm11 = vcmp.ne.s32.totalorder %v527_v9, 15 }
  0xe1   :  { %v1223_v5 = vld.sshfl [vmem:[#allocation1] sm:$0xff pattern:$0x73625140]  ;;  %v1225_v51 = vld.sshfl [vmem:[#allocation1 + $0x8] sm:$0xff pattern:$0x73625140] }
  0xe2   :  { %674 = vst [vmem:[#allocation1] ss:$4 sm:$0xff] %v1096_v21 }
  0xe3   :  { %v1265_v9 = vld.sshfl [vmem:[#allocation1 + $0x20] sm:$0xff pattern:$0x73625140] }
  0xe9   :  { %v1234_v0 = vld.sshfl [vmem:[#allocation1] sm:$0xff pattern:$0x73625140]  ;;  %v1236_v36 = vld.sshfl [vmem:[#allocation1 + $0x8] sm:$0xff pattern:$0x73625140] }
  0xea   :  { %681 = vst [vmem:[#allocation1] ss:$4 sm:$0xff] %v1107_v27 }
  0xfc   :  { %787 = vadd.xlane.f32.xlu0 %v786_v38 }
 0x104   :  { %790 = vadd.xlane.f32.xlu2 %v789_v2  ;;  %v526_v2 = vadd.s32 128, %v1227_v29 }
 0x106   :  { %v528_v58 = vand.u32 15, %v526_v2  ;;  %vm534_vm13 = vcmp.lt.s32.totalorder %v526_v2, 240 }
 0x108   :  { %vm530_vm12 = vcmp.ne.s32.totalorder %v528_v58, 15 }
 0x10d   :  { %v607_v45 = vpop.permute.xlu2 %606 }
 0x114   :  { %v561_v50 = vpop.permute.xlu0 %560  ;;  %v569_v16 = vpop.permute.xlu1 %568 }
 0x115   :  { %v576_v1 = vsel %vm574_vm9, %v561_v50, %v569_v16  ;;  %v580_v35 = vsel %vm574_vm9, %v569_v16, %v561_v50 }
 0x116   :  { %v652_v56 = vsub.f32 %v576_v1, %v634_v31  ;;  %v653_v43 = vsub.f32 %v580_v35, %v635_v44  ;;  %v1250_v31 = vld.sshfl [vmem:[#allocation1] sm:$0xff pattern:$0x73625140]  ;;  %v1252_v35 = vld.sshfl [vmem:[#allocation1 + $0x8] sm:$0xff pattern:$0x73625140] }
 0x117   :  { %816 = vst [vmem:[#allocation1] ss:$4 sm:$0xff] %v1096_v21 }
 0x118   :  { %v660_v46 = vand.u32 2147483647, %v652_v56  ;;  %v661_v44 = vand.u32 2147483647, %v653_v43  ;;  %v1538_v56 = vmov 0.0  }
 0x119   :  { %v1257_v58 = vsel %vm529_vm11, 0.004166667, %v1538_v56  ;;  %v1260_v47 = vsel %vm530_vm12, 0.004166667, %v1538_v56  ;;  %v1263_v2 = vsel %vm534_vm13, 0.004166667, %v1538_v56 }
 0x11a   :  { %v1267_v43 = vld.sshfl [vmem:[#allocation1 + $0x28] sm:$0xff pattern:$0x73625140]  ;;  %v668_v21 = vmul.f32 %v660_v46, %v1257_v58  ;;  %v669_v40 = vmul.f32 %v661_v44, %v1260_v47 }
 0x11b   :  { %819 = vst [vmem:[#allocation1 + $0x20] ss:$4 sm:$0xff] %v1069_v8 }
 0x11c   :  { %v1242_v39 = vpop.permute.xlu0 %564  ;;  %v563_v42 = vpop.permute.xlu2 %562 }
 0x122   :  { %v1276_v46 = vld.sshfl [vmem:[#allocation1 + $0x28] sm:$0xff pattern:$0x73625140] }
 0x123   :  { %1539 = vst [vmem:[#allocation33_spill] sm:$0xff] %v1276_v46 }
 0x124   :  { %v615_v41 = vpop.permute.xlu1 %614  ;;  %v605_v38 = vpop.permute.xlu2 %604  ;;  %823 = vst [vmem:[#allocation1 + $0x20] ss:$4 sm:$0xff] %v1085_v15 }
 0x125   :  { %v622_v50 = vsel %vm620_vm10, %v607_v45, %v615_v41  ;;  %v626_v1 = vsel %vm620_vm10, %v615_v41, %v607_v45 }
 0x126   :  { %v697_v16 = vsub.f32 %v622_v50, %v679_v24  ;;  %v698_v18 = vsub.f32 %v626_v1, %v680_v20  ;;  %v775_v1 = vld [vmem:[#allocation2 + $0x4] sm:$0x3] }
 0x127   :  { %v779_v32 = vsub.f32 %v1107_v27, %v775_v1 }
 0x128   :  { %v705_v41 = vand.u32 2147483647, %v697_v16  ;;  %v706_v45 = vand.u32 2147483647, %v698_v18 }
 0x12a   :  { %v713_v24 = vmul.f32 0.004166667, %v705_v41  ;;  %v714_v20 = vmul.f32 %v706_v45, %v1263_v2  ;;  %v783_v45 = vand.u32 2147483647, %v779_v32 }
 0x12c   :  { %v559_v50 = vpop.permute.xlu0 %558  ;;  %v721_v56 = vadd.f32 %v713_v24, %v668_v21  ;;  %v722_v17 = vadd.f32 %v714_v20, %v669_v40  ;;  %v567_v44 = vpop.permute.xlu1 %566 }
 0x12d   :  { %v575_v8 = vsel %vm574_vm9, %v559_v50, %v567_v44  ;;  %v579_v21 = vsel %vm574_vm9, %v567_v44, %v559_v50  ;;  %v617_v40 = vpop.permute.xlu2 %616 }
 0x12e   :  { %v732_v18 = vsel %vm18_vm0, %v721_v56, 0.0  ;;  %v733_v16 = vsel %vm18_vm0, %v722_v17, 0.0  ;;  %v792_v17 = vsel %vm768_vm8, %v783_v45, 0.0  ;;  %v650_v24 = vsub.f32 %v575_v8, %v1218_v49 }
 0x12f   :  { %v734_v37 = vadd.f32 %v733_v16, %v732_v18 }
 0x130   :  { %v658_v18 = vand.u32 2147483647, %v650_v24 }
 0x131   :  { %735 = vadd.xlane.f32.xlu2 %v734_v37  ;;  %v651_v37 = vsub.f32 %v579_v21, %v1220_v48 }
 0x133   :  { %v659_v16 = vand.u32 2147483647, %v651_v37 }
 0x134   :  { %v571_v41 = vpop.permute.xlu0 %570 }
 0x135   :  { %v577_v32 = vsel %vm574_vm9, %v563_v42, %v571_v41  ;;  %v581_v1 = vsel %vm574_vm9, %v571_v41, %v563_v42  ;;  %v666_v42 = vmul.f32 %v658_v18, %v1257_v58  ;;  %v667_v41 = vmul.f32 %v659_v16, %v1260_v47 }
 0x136   :  { %v654_v44 = vsub.f32 %v577_v32, %v1223_v5  ;;  %v655_v45 = vsub.f32 %v581_v1, %v1225_v51 }
 0x138   :  { %v662_v24 = vand.u32 2147483647, %v654_v44  ;;  %v663_v37 = vand.u32 2147483647, %v655_v45 }
 0x139   :  { %793 = vadd.xlane.f32.xlu2 %v792_v17 }
 0x13c   :  { %v613_v20 = vpop.permute.xlu0 %612 }
 0x13d   :  { %v621_v56 = vsel %vm620_vm10, %v605_v38, %v613_v20  ;;  %v625_v50 = vsel %vm620_vm10, %v613_v20, %v605_v38  ;;  %v611_v38 = vpop.permute.xlu2 %610 }
 0x13e   :  { %v695_v49 = vsub.f32 %v621_v56, %v1234_v0  ;;  %v696_v48 = vsub.f32 %v625_v50, %v1236_v36 }
 0x140   :  { %v703_v8 = vand.u32 2147483647, %v695_v49  ;;  %v704_v21 = vand.u32 2147483647, %v696_v48 }
 0x142   :  { %v711_v17 = vmul.f32 0.004166667, %v703_v8  ;;  %v712_v46 = vmul.f32 %v704_v21, %v1263_v2  ;;  %v670_v8 = vmul.f32 %v662_v24, %v1257_v58  ;;  %v671_v21 = vmul.f32 %v663_v37, %v1260_v47 }
 0x144   :  { %v609_v20 = vpop.permute.xlu1 %608  ;;  %v719_v0 = vadd.f32 %v711_v17, %v666_v42  ;;  %v720_v56 = vadd.f32 %v712_v46, %v667_v41  ;;  %v619_v36 = vpop.permute.xlu0 %618 }
 0x145   :  { %v623_v5 = vsel %vm620_vm10, %v609_v20, %v617_v40  ;;  %v627_v51 = vsel %vm620_vm10, %v617_v40, %v609_v20  ;;  %v624_v32 = vsel %vm620_vm10, %v611_v38, %v619_v36  ;;  %v628_v1 = vsel %vm620_vm10, %v619_v36, %v611_v38 }
 0x146   :  { %v699_v50 = vsub.f32 %v623_v5, %v1250_v31  ;;  %v700_v18 = vsub.f32 %v627_v51, %v1252_v35  ;;  %v727_v16 = vsel %vm18_vm0, %v719_v0, 0.0  ;;  %v728_v46 = vsel %vm18_vm0, %v720_v56, 0.0  ;;  %v776_v35 = vld [vmem:[#allocation2 + $0x6] sm:$0x3] }
 0x147   :  { %v729_v49 = vadd.f32 %v728_v46, %v727_v16  ;;  %v701_v45 = vsub.f32 %v624_v32, %v1265_v9  ;;  %v702_v40 = vsub.f32 %v628_v1, %v1267_v43  ;;  %v780_v24 = vsub.f32 %v1085_v15, %v776_v35 }
 0x148   :  { %v707_v48 = vand.u32 2147483647, %v699_v50  ;;  %v708_v44 = vand.u32 2147483647, %v700_v18 }
 0x149   :  { %730 = vadd.xlane.f32.xlu1 %v729_v49  ;;  %v709_v41 = vand.u32 2147483647, %v701_v45  ;;  %v710_v17 = vand.u32 2147483647, %v702_v40  ;;  %v784_v15 = vand.u32 2147483647, %v780_v24 }
 0x14a   :  { %v715_v42 = vmul.f32 0.004166667, %v707_v48  ;;  %v716_v31 = vmul.f32 %v708_v44, %v1263_v2  ;;  %v151_v45 = vsel %vm18_vm0, %v1038_v55, 0.0  ;;  %v934_v55 = vpop.eup %933 }
 0x14b   :  { %v717_v32 = vmul.f32 0.004166667, %v709_v41  ;;  %v718_v1 = vmul.f32 %v710_v17, %v1263_v2  ;;  %v795_v48 = vsel %vm768_vm8, %v784_v15, 0.0  ;;  %v150_v2 = vsel %vm18_vm0, %v1034_v53, 0.0 }
 0x14c   :  { %v573_v38 = vpop.permute.xlu1 %572  ;;  %v723_v20 = vadd.f32 %v715_v42, %v670_v8  ;;  %v724_v0 = vadd.f32 %v716_v31, %v671_v21  ;;  %v152_v8 = vadd.f32 %v151_v45, %v150_v2  ;;  %v182_v21 = vsel %vm18_vm0, %v1057_v3, 0.0 }
 0x14d   :  { %v578_v9 = vsel %vm574_vm9, %v1242_v39, %v573_v38  ;;  %v582_v43 = vsel %vm574_vm9, %v573_v38, %v1242_v39  ;;  %v184_v42 = vadd.f32 %v183_v57, %v182_v21  ;;  %v185_v53 = vsel %vm18_vm0, %v1076_v11, 0.0  ;;  %v1543_v21 = vld [vmem:[#allocation4_spill] sm:$0xff] }
 0x14e   :  { %v656_v37 = vsub.f32 %v578_v9, %v1204_v30  ;;  %v657_v56 = vsub.f32 %v582_v43, %v1206_v10  ;;  %v737_v36 = vsel %vm18_vm0, %v723_v20, 0.0  ;;  %v738_v5 = vsel %vm18_vm0, %v724_v0, 0.0 }
 0x14f   :  { %v739_v51 = vadd.f32 %v738_v5, %v737_v36  ;;  %v91_v31 = vmul.f32 0.6931472, %v932_v59  ;;  %v189_v3 = vsel %vm18_vm0, %v1059_v4, 0.0  ;;  %v93_v17 = vmul.f32 0.6931472, %v934_v55  ;;  %v1544_v55 = vld [vmem:[#allocation11_spill] sm:$0xff] }
 0x150   :  { %v664_v50 = vand.u32 2147483647, %v656_v37  ;;  %v665_v18 = vand.u32 2147483647, %v657_v56  ;;  %v186_v38 = vadd.f32 %v185_v53, %v184_v42  ;;  %v187_v11 = vsel %vm18_vm0, %v1080_v13, 0.0 }
 0x151   :  { %740 = vadd.xlane.f32.xlu1 %v739_v51  ;;  %v190_v0 = vsel %vm18_vm0, %v1064_v7, 0.0  ;;  %v192_v4 = vsel %vm18_vm0, %v1078_v12, 0.0  ;;  %v199_v56 = vmul.f32 4.0, %v93_v17  ;;  %v270_v5 = vsel %vm18_vm0, %v1115_v33, 0.0 }
 0x152   :  { %v672_v16 = vmul.f32 %v664_v50, %v1257_v58  ;;  %v673_v39 = vmul.f32 %v665_v18, %v1260_v47  ;;  %v143_v58 = vsel %vm18_vm0, %v1032_v52, 0.0  ;;  %v144_v47 = vsel %vm18_vm0, %v1036_v54, 0.0 }
 0x153   :  { %v145_v40 = vadd.f32 %v144_v47, %v143_v58  ;;  %v146_v52 = vsel %vm18_vm0, %v1046_v60, 0.0  ;;  %v153_v54 = vsel %vm18_vm0, %v1048_v61, 0.0  ;;  %v155_v60 = vsel %vm18_vm0, %v1053_v63, 0.0  ;;  %v1542_v47 = vld [vmem:[#allocation3_spill] sm:$0xff] }
 0x154   :  { %v725_v46 = vadd.f32 %v717_v32, %v672_v16  ;;  %v726_v30 = vadd.f32 %v718_v1, %v673_v39  ;;  %v154_v41 = vadd.f32 %v153_v54, %v152_v8  ;;  %v188_v9 = vadd.f32 %v187_v11, %v186_v38  ;;  %v1546_v38 = vld [vmem:[#allocation15_spill] sm:$0xff] }
 0x155   :  { %v147_v35 = vadd.f32 %v146_v52, %v145_v40  ;;  %v191_v43 = vadd.f32 %v190_v0, %v189_v3  ;;  %v198_v63 = vmul.f32 4.0, %v91_v31  ;;  %v271_v13 = vsel %vm18_vm0, %v1093_v19, 0.0 }
 0x156   :  { %v742_v10 = vsel %vm18_vm0, %v725_v46, 0.0  ;;  %v743_v49 = vsel %vm18_vm0, %v726_v30, 0.0  ;;  %v156_v20 = vadd.f32 %v155_v60, %v154_v41  ;;  %v273_v7 = vsel %vm18_vm0, %v1123_v23, 0.0  ;;  %v1545_v41 = vld [vmem:[#allocation12_spill] sm:$0xff] }
 0x157   :  { %v744_v44 = vadd.f32 %v743_v49, %v742_v10  ;;  %v149_v61 = vadd.f32 %v148_v6, %v147_v35  ;;  %v193_v36 = vadd.f32 %v192_v4, %v191_v43  ;;  %v200_v51 = vsub.f32 %v198_v63, %v188_v9  ;;  %v1540_v49 = vld [vmem:[#allocation8_spill] sm:$0xff]  ;;  %v1548_v43 = vld [vmem:[#allocation13_spill] sm:$0xff] }
 0x158   :  { %v197_v37 = vsub.f32 %v93_v17, %v156_v20  ;;  %v272_v12 = vadd.f32 %v271_v13, %v270_v5  ;;  %v277_v50 = vsel %vm18_vm0, %v1117_v34, 0.0  ;;  %v278_v18 = vsel %vm18_vm0, %v1098_v22, 0.0  ;;  %v1541_v22 = vld [vmem:[#allocation5_spill] sm:$0xff]  ;;  %v1547_v20 = vld [vmem:[#allocation16_spill] sm:$0xff]  ;;  %v1551_v13 = vld [vmem:[#allocation10_spill] sm:$0xff] }
 0x159   :  { %745 = vadd.xlane.f32.xlu0 %v744_v44  ;;  %796 = vadd.xlane.f32.xlu1 %v795_v48  ;;  %v196_v24 = vsub.f32 %v91_v31, %v149_v61  ;;  %v195_v1 = vadd.f32 %v194_v62, %v193_v36  ;;  %v204_v33 = vmul.f32 0.025, %v200_v51  ;;  %v279_v39 = vadd.f32 %v278_v18, %v277_v50  ;;  %v1549_v62 = vld [vmem:[#allocation14_spill] sm:$0xff]  ;;  %v1550_v36 = vld [vmem:[#allocation9_spill] sm:$0xff] }
 0x15a   :  { %v274_v16 = vadd.f32 %v273_v7, %v272_v12  ;;  %v203_v15 = vmul.f32 0.9, %v197_v37  ;;  %v233_v23 = vsel %vm18_vm0, %v1102_v25, 0.0  ;;  %v234_v46 = vsel %vm18_vm0, %v1104_v26, 0.0 }
 0x15b   :  { %v202_v32 = vmul.f32 0.9, %v196_v24  ;;  %v201_v19 = vsub.f32 %v199_v56, %v195_v1  ;;  %v235_v10 = vadd.f32 %v234_v46, %v233_v23  ;;  %v280_v34 = vsel %vm18_vm0, %v1540_v49, 0.0 }
 0x15c   :  { %v276_v28 = vadd.f32 %v275_v14, %v274_v16  ;;  %v281_v44 = vadd.f32 %v280_v34, %v279_v39  ;;  %v282_v58 = vsel %vm18_vm0, %v1541_v22, 0.0  ;;  %v330_v61 = vsel %vm18_vm0, %v1546_v38, 0.0  ;;  %v1552_v16 = vld [vmem:[#allocation21_spill] sm:$0xff] }
 0x15d   :  { %v206_v30 = vadd.f32 %v204_v33, %v202_v32  ;;  %v205_v48 = vmul.f32 0.025, %v201_v19  ;;  %v331_v11 = vsel %vm18_vm0, %v1547_v20, 0.0  ;;  %v408_v4 = vsel %vm18_vm0, %v1548_v43, 0.0  ;;  %v1553_v19 = vld [vmem:[#allocation22_spill] sm:$0xff] }
 0x15e   :  { %v284_v45 = vsub.f32 1.0, %v276_v28  ;;  %v283_v25 = vadd.f32 %v282_v58, %v281_v44  ;;  %v332_v0 = vadd.f32 %v331_v11, %v330_v61  ;;  %v345_v5 = vsel %vm18_vm0, %v1550_v36, 0.0  ;;  %v1563_v20 = vld [vmem:[#allocation18_spill] sm:$0xff] }
 0x15f   :  { %v214_v2 = vmul.f32 %v1542_v47, %v206_v30  ;;  %v207_v40 = vadd.f32 %v205_v48, %v203_v15  ;;  %v346_v7 = vsel %vm18_vm0, %v1551_v13, 0.0  ;;  %v481_v39 = vsel %vm18_vm0, %v1552_v16, 0.0  ;;  %v1565_v43 = vld [vmem:[#allocation30_spill] sm:$0xff] }
 0x160   :  { %v286_v8 = vmul.f32 %v284_v45, %v284_v45  ;;  %v285_v59 = vsub.f32 1.0, %v283_v25  ;;  %v347_v32 = vadd.f32 %v346_v7, %v345_v5  ;;  %v482_v15 = vsel %vm18_vm0, %v1553_v19, 0.0  ;;  %v817_v45 = vld.sshfl [vmem:[#allocation1 + $0x8] sm:$0xff pattern:$0x73625140]  ;;  %v1568_v5 = vld [vmem:[#allocation25_spill] sm:$0xff] }
 0x161   :  { %236 = vadd.xlane.f32.xlu0 %v235_v10  ;;  %v215_v26 = vmul.f32 %v1543_v21, %v207_v40  ;;  %v216_v57 = vsel %vm18_vm0, %v214_v2, 0.0  ;;  %v483_v28 = vadd.f32 %v482_v15, %v481_v39  ;;  %v1554_v40 = vld [vmem:[#allocation6_spill] sm:$0xff]  ;;  %821 = vst [vmem:[#allocation1] ss:$4 sm:$0xff] %v1107_v27  ;;  %v1562_v27 = vld [vmem:[#allocation17_spill] sm:$0xff]  ;;  %v419_v11 = vsel %vm18_vm0, %v1563_v20, 0.0 }
 0x162   :  { %v288_v52 = vmul.f32 %v286_v8, %v196_v24  ;;  %v287_v42 = vmul.f32 %v285_v59, %v285_v59  ;;  %v409_v24 = vsel %vm18_vm0, %v1549_v62, 0.0  ;;  %v335_v25 = vsel %vm18_vm0, %v1554_v40, 0.0  ;;  %v1555_v8 = vld [vmem:[#allocation7_spill] sm:$0xff]  ;;  %v1557_v59 = vld [vmem:[#allocation24_spill] sm:$0xff]  ;;  %v1569_v7 = vld [vmem:[#allocation26_spill] sm:$0xff] }
 0x163   :  { %v217_v54 = vsel %vm18_vm0, %v215_v26, 0.0  ;;  %v336_v21 = vsel %vm18_vm0, %v1555_v8, 0.0  ;;  %v1556_v26 = vld [vmem:[#allocation23_spill] sm:$0xff]  ;;  %v418_v61 = vsel %vm18_vm0, %v1562_v27, 0.0  ;;  %v491_v13 = vsel %vm18_vm0, %v1568_v5, 0.0 }
 0x164   :  { %v218_v53 = vadd.f32 %v217_v54, %v216_v57  ;;  %v295_v31 = vmul.f32 %v1544_v55, %v288_v52  ;;  %v289_v35 = vmul.f32 %v287_v42, %v197_v37  ;;  %v410_v37 = vadd.f32 %v409_v24, %v408_v4 }
 0x165   :  { %v403_v57 = vsel %vm18_vm0, %v1556_v26, 0.0  ;;  %v404_v52 = vsel %vm18_vm0, %v1557_v59, 0.0  ;;  %v337_v54 = vadd.f32 %v336_v21, %v335_v25  ;;  %v477_v4 = vsel %vm18_vm0, %v1565_v43, 0.0 }
 0x166   :  { %219 = vadd.xlane.f32.xlu2 %v218_v53  ;;  %v296_v3 = vmul.f32 %v1545_v41, %v289_v35  ;;  %v297_v17 = vsel %vm18_vm0, %v295_v31, 0.0  ;;  %v405_v42 = vadd.f32 %v404_v52, %v403_v57  ;;  %v1558_v53 = vld [vmem:[#allocation19_spill] sm:$0xff]  ;;  %v1559_v31 = vld [vmem:[#allocation20_spill] sm:$0xff]  ;;  %v420_v62 = vadd.f32 %v419_v11, %v418_v61 }
 0x167   :  { %v340_v55 = vsel %vm18_vm0, %v1558_v53, 0.0  ;;  %v341_v35 = vsel %vm18_vm0, %v1559_v31, 0.0  ;;  %v1560_v41 = vld [vmem:[#allocation27_spill] sm:$0xff] }
 0x168   :  { %v298_v6 = vsel %vm18_vm0, %v296_v3, 0.0  ;;  %v413_v3 = vsel %vm18_vm0, %v1560_v41, 0.0 }
 0x169   :  { %v299_v60 = vadd.f32 %v298_v6, %v297_v17  ;;  %v1561_v17 = vld [vmem:[#allocation28_spill] sm:$0xff] }
 0x16a   :  { %v414_v6 = vsel %vm18_vm0, %v1561_v17, 0.0 }
 0x16b   :  { %300 = vadd.xlane.f32.xlu1 %v299_v60  ;;  %v342_v60 = vadd.f32 %v341_v35, %v340_v55  ;;  %v415_v38 = vadd.f32 %v414_v6, %v413_v3 }
 0x16f   :  { %v788_v51 = vpop.xlane.xlu0 %787 }
 0x170   :  { %v798_v14 = vsel %vm747_vm14, %v788_v51, 0.0  ;;  %v492_v51 = vsel %vm18_vm0, %v1569_v7, 0.0 }
 0x173   :  { %333 = vadd.xlane.f32.xlu1 %v332_v0  ;;  %v1564_v0 = vld [vmem:[#allocation29_spill] sm:$0xff] }
 0x177   :  { %v791_v9 = vpop.xlane.xlu2 %790 }
 0x178   :  { %v799_v1 = vsel %vm747_vm14, %v791_v9, 0.0  ;;  %v476_v9 = vsel %vm18_vm0, %v1564_v0, 0.0 }
 0x179   :  { %v800_v33 = vadd.f32 %v799_v1, %v798_v14  ;;  %v478_v24 = vadd.f32 %v477_v4, %v476_v9  ;;  %v824_v1 = vld.sshfl [vmem:[#allocation1 + $0x28] sm:$0xff pattern:$0x73625140] }
 0x17a   :  { %v822_v14 = vld.sshfl [vmem:[#allocation1 + $0x8] sm:$0xff pattern:$0x73625140] }
 0x17b   :  { %411 = vadd.xlane.f32.xlu1 %v410_v37  ;;  %v1566_v37 = vld [vmem:[#allocation31_spill] sm:$0xff] }
 0x183   :  { %348 = vadd.xlane.f32.xlu1 %v347_v32 }
 0x18b   :  { %484 = vadd.xlane.f32.xlu1 %v483_v28 }
 0x1a4   :  { %v736_v56 = vpop.xlane.xlu2 %735  ;;  %825 = vrot.lane.b32.xlu1 %v817_v45, %s938_s22 }
 0x1a5   :  { %v749_v23 = vsel %vm747_vm14, %v736_v56, 0.0  ;;  %v1567_v56 = vld [vmem:[#allocation32_spill] sm:$0xff] }
 0x1a6   :  { %v487_v36 = vsel %vm18_vm0, %v1567_v56, 0.0 }
 0x1ac   :  { %v794_v50 = vpop.xlane.xlu2 %793  ;;  %831 = vrot.lane.b32.xlu1 %v824_v1, %s938_s22 }
 0x1ad   :  { %v801_v46 = vsel %vm747_vm14, %v794_v50, 0.0  ;;  %v1570_v50 = vld [vmem:[#allocation33_spill] sm:$0xff] }
 0x1ae   :  { %v802_v49 = vadd.f32 %v801_v46, %v800_v33 }
 0x1bc   :  { %v731_v63 = vpop.xlane.xlu1 %730 }
 0x1bd   :  { %v748_v18 = vsel %vm747_vm14, %v731_v63, 0.0  ;;  %v486_v63 = vsel %vm18_vm0, %v1566_v37, 0.0 }
 0x1be   :  { %v750_v10 = vadd.f32 %v749_v23, %v748_v18  ;;  %v488_v32 = vadd.f32 %v487_v36, %v486_v63 }
 0x1c4   :  { %v741_v12 = vpop.xlane.xlu1 %740 }
 0x1c5   :  { %v751_v30 = vsel %vm747_vm14, %v741_v12, 0.0  ;;  %v493_v12 = vadd.f32 %v492_v51, %v491_v13 }
 0x1c6   :  { %v752_v34 = vadd.f32 %v751_v30, %v750_v10 }
 0x1cc   :  { %v746_v48 = vpop.xlane.xlu0 %745  ;;  %v797_v44 = vpop.xlane.xlu1 %796 }
 0x1cd   :  { %v753_v22 = vsel %vm747_vm14, %v746_v48, 0.0  ;;  %v803_v58 = vsel %vm747_vm14, %v797_v44, 0.0 }
 0x1ce   :  { %v754_v47 = vadd.f32 %v753_v22, %v752_v34  ;;  %v804_v2 = vadd.f32 %v803_v58, %v802_v49 }
 0x1d0   :  { %755 = vadd.xlane.f32.xlu2 %v754_v47  ;;  %805 = vadd.xlane.f32.xlu0 %v804_v2 }
 0x1d4   :  { %v237_v18 = vpop.xlane.xlu0 %236 }
 0x1d5   :  { %v238_v33 = vrot.slane %v237_v18, 4 }
 0x1d7   :  { %v239_v16 = vadd.f32 %v238_v33, %v237_v18 }
 0x1d8   :  { %338 = vadd.xlane.f32.xlu2 %v337_v54  ;;  %406 = vadd.xlane.f32.xlu0 %v405_v42 }
 0x1d9   :  { %v240_v39 = vrot.slane %v239_v16, 2  ;;  %v220_v19 = vpop.xlane.xlu2 %219 }
 0x1da   :  { %v221_v15 = vrot.slane %v220_v19, 4 }
 0x1db   :  { %v241_v23 = vadd.f32 %v240_v39, %v239_v16 }
 0x1dc   :  { %v222_v46 = vadd.f32 %v221_v15, %v220_v19 }
 0x1dd   :  { %v242_v28 = vrot.slane %v241_v23, 1 }
 0x1de   :  { %v223_v30 = vrot.slane %v222_v46, 2  ;;  %v301_v10 = vpop.xlane.xlu1 %300 }
 0x1df   :  { %v302_v49 = vrot.slane %v301_v10, 4  ;;  %v243_v22 = vadd.f32 %v242_v28, %v241_v23 }
 0x1e0   :  { %343 = vadd.xlane.f32.xlu2 %v342_v60  ;;  %416 = vadd.xlane.f32.xlu0 %v415_v38  ;;  %v224_v34 = vadd.f32 %v223_v30, %v222_v46 }
 0x1e1   :  { %v303_v48 = vadd.f32 %v302_v49, %v301_v10 }
 0x1e2   :  { %v225_v44 = vrot.slane %v224_v34, 1 }
 0x1e3   :  { %v304_v58 = vrot.slane %v303_v48, 2 }
 0x1e4   :  { %v226_v47 = vadd.f32 %v225_v44, %v224_v34 }
 0x1e5   :  { %v305_v2 = vadd.f32 %v304_v58, %v303_v48 }
 0x1e6   :  { %905 = vpush %v226_v47  ;;  %v334_v25 = vpop.xlane.xlu1 %333 }
 0x1e7   :  { %907 = vpush %v243_v22  ;;  %v306_v45 = vrot.slane %v305_v2, 1  ;;  %v350_v41 = vsel %vm18_vm0, %v334_v25, 0.0 }
 0x1e8   :  { %421 = vadd.xlane.f32.xlu2 %v420_v62  ;;  %479 = vadd.xlane.f32.xlu0 %v478_v24  ;;  %v351_v61 = vrot.slane %v350_v41, 4 }
 0x1e9   :  { %v307_v40 = vadd.f32 %v306_v45, %v305_v2 }
 0x1ea   :  { %v352_v62 = vadd.f32 %v351_v61, %v350_v41 }
 0x1eb   :  { %909 = vpush %v307_v40 }
 0x1ec   :  { %v353_v1 = vrot.slane %v352_v62, 2 }
 0x1ee   :  { %v412_v8 = vpop.xlane.xlu1 %411  ;;  %v354_v15 = vadd.f32 %v353_v1, %v352_v62 }
 0x1ef   :  { %v430_v27 = vsel %vm18_vm0, %v412_v8, 0.0 }
 0x1f0   :  { %489 = vadd.xlane.f32.xlu2 %v488_v32  ;;  %494 = vadd.xlane.f32.xlu0 %v493_v12  ;;  %v431_v43 = vrot.slane %v430_v27, 4  ;;  %v355_v45 = vrot.slane %v354_v15, 1 }
 0x1f2   :  { %v432_v13 = vadd.f32 %v431_v43, %v430_v27 }
 0x1f4   :  { %v433_v19 = vrot.slane %v432_v13, 2 }
 0x1f6   :  { %v349_v55 = vpop.xlane.xlu1 %348  ;;  %v434_v44 = vadd.f32 %v433_v19, %v432_v13 }
 0x1f7   :  { %v371_v56 = vsel %vm18_vm0, %v349_v55, 0.0  ;;  %v356_v55 = vadd.f32 %v355_v45, %v354_v15 }
 0x1fe   :  { %v485_v4 = vpop.xlane.xlu1 %484 }
 0x1ff   :  { %v503_v36 = vsel %vm18_vm0, %v485_v4, 0.0 }
 0x200   :  { %v504_v18 = vrot.slane %v503_v36, 4 }
 0x202   :  { %v505_v30 = vadd.f32 %v504_v18, %v503_v36 }
 0x204   :  { %829 = vrot.lane.b32.xlu0 %v822_v14, %s938_s22  ;;  %v506_v8 = vrot.slane %v505_v30, 2 }
 0x206   :  { %v507_v41 = vadd.f32 %v506_v8, %v505_v30 }
 0x208   :  { %827 = vrot.lane.b32.xlu2 %v1570_v50, %s938_s22  ;;  %v372_v50 = vrot.slane %v371_v56, 4 }
 0x20a   :  { %v373_v46 = vadd.f32 %v372_v50, %v371_v56  ;;  %v508_v56 = vrot.slane %v507_v41, 1 }
 0x20c   :  { %v374_v25 = vrot.slane %v373_v46, 2  ;;  %v509_v18 = vadd.f32 %v508_v56, %v507_v41 }
 0x217   :  { %s906_s25 = spop %905 }
 0x218   :  { %s908_s26 = spop %907 }
 0x21c   :  { %s910_s27 = spop %909 }
 0x243   :  { %v756_v21 = vpop.xlane.xlu2 %755  ;;  %v806_v26 = vpop.xlane.xlu0 %805 }
 0x244   :  { %v757_v57 = vrot.slane %v756_v21, 4  ;;  %v807_v59 = vrot.slane %v806_v26, 4 }
 0x246   :  { %v758_v52 = vadd.f32 %v757_v57, %v756_v21  ;;  %v808_v54 = vadd.f32 %v807_v59, %v806_v26 }
 0x248   :  { %v759_v42 = vrot.slane %v758_v52, 2  ;;  %v809_v53 = vrot.slane %v808_v54, 2 }
 0x24a   :  { %v760_v31 = vadd.f32 %v759_v42, %v758_v52  ;;  %v810_v35 = vadd.f32 %v809_v53, %v808_v54  ;;  %v435_v54 = vrot.slane %v434_v44, 1 }
 0x24b   :  { %v339_v3 = vpop.xlane.xlu2 %338  ;;  %v407_v17 = vpop.xlane.xlu0 %406 }
 0x24c   :  { %v761_v6 = vrot.slane %v760_v31, 1  ;;  %v811_v60 = vrot.slane %v810_v35, 1  ;;  %v423_v38 = vsel %vm18_vm0, %v407_v17, 0.0  ;;  %v357_v0 = vsel %vm18_vm0, %v339_v3, 0.0 }
 0x24d   :  { %v424_v9 = vrot.slane %v423_v38, 4  ;;  %v358_v24 = vrot.slane %v357_v0, 4 }
 0x24e   :  { %v762_v20 = vadd.f32 %v761_v6, %v760_v31  ;;  %v812_v11 = vadd.f32 %v811_v60, %v810_v35  ;;  %v375_v35 = vadd.f32 %v374_v25, %v373_v46 }
 0x24f   :  { %v425_v5 = vadd.f32 %v424_v9, %v423_v38  ;;  %v359_v14 = vadd.f32 %v358_v24, %v357_v0  ;;  %v826_v9 = vpop.permute.xlu1 %825 }
 0x250   :  { %911 = vpush %v762_v20  ;;  %v436_v20 = vadd.f32 %v435_v54, %v434_v44 }
 0x251   :  { %913 = vpush %v812_v11  ;;  %v426_v39 = vrot.slane %v425_v5, 2  ;;  %v360_v23 = vrot.slane %v359_v14, 2 }
 0x252   :  { %837 = vst.msk [vmem:[#allocation2] sm:$0x3] %vm768_vm8, %v826_v9 }
 0x253   :  { %v344_v37 = vpop.xlane.xlu2 %343  ;;  %v417_v63 = vpop.xlane.xlu0 %416  ;;  %v427_v48 = vadd.f32 %v426_v39, %v425_v5  ;;  %v361_v40 = vadd.f32 %v360_v23, %v359_v14 }
 0x254   :  { %v364_v7 = vsel %vm18_vm0, %v344_v37, 0.0  ;;  %v437_v51 = vsel %vm18_vm0, %v417_v63, 0.0  ;;  %v376_v37 = vrot.slane %v375_v35, 1 }
 0x255   :  { %v365_v32 = vrot.slane %v364_v7, 4  ;;  %v438_v12 = vrot.slane %v437_v51, 4  ;;  %v428_v52 = vrot.slane %v427_v48, 1  ;;  %v362_v31 = vrot.slane %v361_v40, 1 }
 0x256   :  { %v377_v14 = vadd.f32 %v376_v37, %v375_v35 }
 0x257   :  { %v366_v33 = vadd.f32 %v365_v32, %v364_v7  ;;  %v439_v16 = vadd.f32 %v438_v12, %v437_v51  ;;  %v429_v61 = vadd.f32 %v428_v52, %v427_v48  ;;  %v363_v24 = vadd.f32 %v362_v31, %v361_v40  ;;  %v832_v30 = vpop.permute.xlu1 %831 }
 0x258   :  { %840 = vst.msk [vmem:[#allocation2 + $0x6] sm:$0x3] %vm768_vm8, %v832_v30  ;;  %v849_v52 = vstv %s910_s27 }
 0x259   :  { %v367_v10 = vrot.slane %v366_v33, 2  ;;  %v440_v28 = vrot.slane %v439_v16, 2  ;;  %v874_v32 = vsel %vm862_vm15, %v436_v20, %v429_v61 }
 0x25b   :  { %v422_v49 = vpop.xlane.xlu2 %421  ;;  %v480_v34 = vpop.xlane.xlu0 %479  ;;  %v368_v21 = vadd.f32 %v367_v10, %v366_v33  ;;  %v441_v26 = vadd.f32 %v440_v28, %v439_v16  ;;  %v863_v33 = vsel %vm862_vm15, %v363_v24, %v356_v55 }
 0x25c   :  { %v444_v22 = vsel %vm18_vm0, %v422_v49, 0.0  ;;  %v496_v58 = vsel %vm18_vm0, %v480_v34, 0.0 }
 0x25d   :  { %v445_v47 = vrot.slane %v444_v22, 4  ;;  %v497_v2 = vrot.slane %v496_v58, 4  ;;  %v369_v3 = vrot.slane %v368_v21, 1  ;;  %v442_v17 = vrot.slane %v441_v26, 1 }
 0x25f   :  { %v446_v57 = vadd.f32 %v445_v47, %v444_v22  ;;  %v498_v59 = vadd.f32 %v497_v2, %v496_v58  ;;  %v370_v36 = vadd.f32 %v369_v3, %v368_v21  ;;  %v443_v5 = vadd.f32 %v442_v17, %v441_v26 }
 0x260   :  { %v842_v21 = vstv %s906_s25  ;;  %v845_v26 = vstv %s908_s26 }
 0x261   :  { %v447_v42 = vrot.slane %v446_v57, 2  ;;  %v499_v53 = vrot.slane %v498_v59, 2  ;;  %v865_v19 = vsel %vm864_vm1, %v370_v36, %v863_v33  ;;  %v875_v15 = vsel %vm864_vm1, %v443_v5, %v874_v32 }
 0x263   :  { %v448_v6 = vadd.f32 %v447_v42, %v446_v57  ;;  %v500_v60 = vadd.f32 %v499_v53, %v498_v59  ;;  %v490_v38 = vpop.xlane.xlu2 %489  ;;  %v495_v27 = vpop.xlane.xlu0 %494  ;;  %v843_v57 = vsel %vm841_vm3, %v842_v21, 0.0  ;;  %v846_v59 = vsel %vm844_vm2, %v845_v26, 0.0 }
 0x264   :  { %v510_v11 = vsel %vm18_vm0, %v490_v38, 0.0  ;;  %v517_v0 = vsel %vm18_vm0, %v495_v27, 0.0  ;;  %vm866_vm0 = vcmask 1043459   ;;  %v847_v54 = vadd.f32 %v846_v59, %v843_v57 }
 0x265   :  { %v449_v43 = vrot.slane %v448_v6, 1  ;;  %v511_v4 = vrot.slane %v510_v11, 4  ;;  %v518_v62 = vrot.slane %v517_v0, 4  ;;  %v501_v63 = vrot.slane %v500_v60, 1 }
 0x266   :  { %v867_v49 = vsel %vm866_vm0, %v377_v14, %v865_v19  ;;  %v850_v42 = vsel %vm848_vm4, %v849_v52, 0.0 }
 0x267   :  { %v512_v13 = vadd.f32 %v511_v4, %v510_v11  ;;  %v519_v7 = vadd.f32 %v518_v62, %v517_v0  ;;  %v450_v51 = vadd.f32 %v449_v43, %v448_v6  ;;  %v502_v50 = vadd.f32 %v501_v63, %v500_v60 }
 0x268   :  { %v869_v58 = vsel %vm841_vm3, %v867_v49, 0.0  ;;  %v851_v53 = vadd.f32 %v850_v42, %v847_v54 }
 0x269   :  { %v513_v12 = vrot.slane %v512_v13, 2  ;;  %v520_v1 = vrot.slane %v519_v7, 2  ;;  %v876_v46 = vsel %vm866_vm0, %v450_v51, %v875_v15  ;;  %v884_v34 = vsel %vm862_vm15, %v509_v18, %v502_v50 }
 0x26a   :  { %v878_v22 = vsel %vm844_vm2, %v876_v46, 0.0 }
 0x26b   :  { %v514_v16 = vadd.f32 %v513_v12, %v512_v13  ;;  %v521_v39 = vadd.f32 %v520_v1, %v519_v7  ;;  %v828_v23 = vpop.permute.xlu2 %827  ;;  %v879_v2 = vadd.f32 %v878_v22, %v869_v58 }
 0x26c   :  { %838 = vst.msk [vmem:[#allocation2 + $0x2] sm:$0x3] %vm768_vm8, %v828_v23 }
 0x26d   :  { %v515_v10 = vrot.slane %v514_v16, 1  ;;  %v522_v28 = vrot.slane %v521_v39, 1 }
 0x26f   :  { %v516_v48 = vadd.f32 %v515_v10, %v514_v16  ;;  %v523_v44 = vadd.f32 %v522_v28, %v521_v39 }
 0x271   :  { %v885_v47 = vsel %vm864_vm1, %v516_v48, %v884_v34 }
 0x272   :  { %v886_v45 = vsel %vm866_vm0, %v523_v44, %v885_v47 }
 0x273   :  { %v888_v40 = vsel %vm848_vm4, %v886_v45, 0.0 }
 0x274   :  { %v889_v25 = vadd.f32 %v888_v40, %v879_v2 }
 0x276   :  { %891 = vst.msk [vmem:[%s1504_s3] sm:$0xf] %vm890_vm5, %v889_v25  ;;  %v830_v8 = vpop.permute.xlu0 %829 }
 0x277   :  { %839 = vst.msk [vmem:[#allocation2 + $0x4] sm:$0x3] %vm768_vm8, %v830_v8 }
 0x281   :  { %s912_s28 = spop %911 }
 0x282   :  { %s914_s29 = spop %913 }
 0x283   :  { %s814_s30 = smul.f32 0.004166667, %s914_s29 }
 0x285   :  { %s815_s3 = sadd.f32 %s912_s28, %s814_s30 }
 0x287   :  { %v853_v55 = vstv %s815_s3 }
 0x288   :  { %v854_v31 = vsel %vm852_vm6, %v853_v55, 0.0 }
 0x289   :  { %v855_v35 = vadd.f32 %v854_v31, %v851_v53 }
 0x28b   :  { %857 = vst.msk [vmem:[%s1505_s2] sm:$0x1] %vm856_vm7, %v855_v35 }

</bundles_post_ra>
